<compile_context>
chip_gen: v5e
topology: v5e:2x2
jax: 0.10.0
libtpu: 0.0.40
codegen_flags: <defaults>
</compile_context>

<pallas_src>
import functools
import math

import jax
import jax.numpy as jnp
from jax.experimental import pallas as pl
from jax.experimental.pallas import tpu as pltpu


# --------------------------------------------------------------------------------------
# Fused forward kernel: one grid step == one batch element, everything stays in VMEM.
# --------------------------------------------------------------------------------------

def _fused_forward_kernel(
    # per-batch data
    te_ref,      # [1, E]   sinusoidal timestep embedding for this batch row
    pe_ref,      # [L, E]   positional-encoding table (shared)
    x_ref,       # [L, Cin] input slab for this batch row
    bias_ref,    # [1, L]   additive key-padding bias (0 / -1e30)
    # global weights (biases pre-reshaped to [1, N]); stored [in, out]
    t1w_ref, t1b_ref, t2w_ref, t2b_ref,
    tt1w_ref, tt1b_ref, tt2w_ref, tt2b_ref,
    u1w_ref, u1b_ref, u2w_ref, u2b_ref,
    d1w_ref, d1b_ref, d2w_ref, d2b_ref,
    # per-layer weights stacked along a leading layer axis
    qkvw_ref, qkvb_ref, outw_ref, outb_ref,
    f1w_ref, f1b_ref, f2w_ref, f2b_ref,
    g1_ref, be1_ref, g2_ref, be2_ref,
    # output
    o_ref,       # [L, Cout]
    *, num_heads, n_layer):
  L, E = pe_ref.shape
  Dh = E // num_heads
  scale = 1.0 / math.sqrt(Dh)

  def mm(a, w):
    return jnp.dot(a, w, preferred_element_type=jnp.float32)

  def silu(v):
    return v * jax.nn.sigmoid(v)

  def l2n(v, axis):
    # torch F.normalize(p=2): x / max(||x||, 1e-12)  ==  x * rsqrt(max(||x||^2, 1e-24))
    ss = jnp.sum(v * v, axis=axis, keepdims=True)
    return v * jax.lax.rsqrt(jnp.maximum(ss, 1e-24))

  def layer_norm(z, g, b):
    mu = jnp.mean(z, axis=-1, keepdims=True)
    zc = z - mu
    var = jnp.mean(zc * zc, axis=-1, keepdims=True)     # biased var (torch LayerNorm)
    return zc * jax.lax.rsqrt(var + 1e-5) * g + b

  # ---- time_embed + time_embed_transform MLP (this batch row) ------------------------
  # Broadcast the single row across 8 sublanes so every matmul sees an aligned M=8.
  emb = jnp.broadcast_to(te_ref[...], (8, E))
  emb = silu(mm(emb, t1w_ref[...]) + t1b_ref[...])       # [8, 4E]
  emb = mm(emb, t2w_ref[...]) + t2b_ref[...]             # [8, E]
  emb = silu(mm(emb, tt1w_ref[...]) + tt1b_ref[...])
  emb = mm(emb, tt2w_ref[...]) + tt2b_ref[...]
  emb = l2n(emb, axis=-1)[0:1, :]                        # F.normalize dim=1 on [N, E]

  # ---- input_up_proj ------------------------------------------------------------------
  ex = jnp.tanh(mm(x_ref[...], u1w_ref[...]) + u1b_ref[...])
  ex = mm(ex, u2w_ref[...]) + u2b_ref[...]               # [L, E]
  ex = l2n(ex, axis=0)            # F.normalize dim=1 == sequence axis of [N, L, E]
  ex = ex + emb                   # emb.unsqueeze(1).expand(-1, L, -1)
  ex = l2n(ex, axis=0)
  h = ex + pe_ref[...]            # PositionalEncoding (dropout = eval identity)

  bias = bias_ref[...]            # [1, L], broadcast over query rows

  # ---- n_layer post-norm TransformerEncoderLayers (relu FFN, dropouts identity) -------
  for i in range(n_layer):
    qkv = mm(h, qkvw_ref[i]) + qkvb_ref[i]               # [L, 3E]
    wo = outw_ref[i]                                     # [E, E]
    attn = None
    for hd in range(num_heads):
      lo = hd * Dh
      q = qkv[:, lo:lo + Dh]                             # [L, Dh]
      k = qkv[:, E + lo:E + lo + Dh]
      v = qkv[:, 2 * E + lo:2 * E + lo + Dh]
      s = mm(q, k.T) * scale + bias                      # [L, L]
      s = s - jnp.max(s, axis=-1, keepdims=True)
      p = jnp.exp(s)
      p = p * pl.reciprocal(jnp.sum(p, axis=-1, keepdims=True), approx=True)
      oh = mm(p, v)                                      # [L, Dh]
      # out_proj(concat(heads)) == sum_h head_h @ Wo[h*Dh:(h+1)*Dh, :]
      part = mm(oh, wo[lo:lo + Dh, :])                   # [L, E]
      attn = part if attn is None else attn + part
    attn = attn + outb_ref[i]
    h = layer_norm(h + attn, g1_ref[i], be1_ref[i])

    ff = jnp.maximum(mm(h, f1w_ref[i]) + f1b_ref[i], 0.0)
    ff = mm(ff, f2w_ref[i]) + f2b_ref[i]
    h = layer_norm(h + ff, g2_ref[i], be2_ref[i])

  # ---- output_down_proj ----------------------------------------------------------------
  h = l2n(h, axis=0)
  out = jnp.tanh(mm(h, d1w_ref[...]) + d1b_ref[...])
  out = mm(out, d2w_ref[...]) + d2b_ref[...]             # [L, Cout]
  out = l2n(out, axis=0)
  o_ref[...] = out.astype(o_ref.dtype)


# --------------------------------------------------------------------------------------
# Host-side glue: tables, weight packing, pallas_call wrapper
# --------------------------------------------------------------------------------------

def timestep_embedding(timesteps, dim, max_period=10000):
  """Sinusoidal timestep embedding (improved-diffusion convention: [cos, sin])."""
  half = dim // 2
  freqs = jnp.exp(-math.log(max_period) * jnp.arange(half, dtype=jnp.float32) / half)
  args = timesteps.astype(jnp.float32)[:, None] * freqs[None, :]
  emb = jnp.concatenate([jnp.cos(args), jnp.sin(args)], axis=-1)
  if dim % 2:
    emb = jnp.concatenate([emb, jnp.zeros_like(emb[:, :1])], axis=-1)
  return emb


def positional_encoding_table(max_len, d_model):
  """Standard sinusoidal PE table [max_len, d_model]."""
  position = jnp.arange(max_len, dtype=jnp.float32)[:, None]
  div_term = jnp.exp(jnp.arange(0, d_model, 2, dtype=jnp.float32)
                     * (-math.log(10000.0) / d_model))
  pe = jnp.zeros((max_len, d_model), jnp.float32)
  pe = pe.at[:, 0::2].set(jnp.sin(position * div_term))
  pe = pe.at[:, 1::2].set(jnp.cos(position * div_term))
  return pe


def _full_spec(shape):
  nd = len(shape)
  return pl.BlockSpec(shape, lambda b, _nd=nd: (0,) * _nd)


def simp_transformer_forward(params, x, x_t_mask, timesteps, *, num_heads, n_layer):
  """Mirrors SimpTransformer.forward (eval mode) with a single fused Pallas kernel."""
  B, L, Cin = x.shape
  E = params["time1_w"].shape[0]          # hidden_channels == model_channels
  Cout = params["down2_w"].shape[1]

  te = timestep_embedding(timesteps, E).reshape(B, 1, E)
  pe = params["pe"][:L, :]
  # Large finite negative instead of -inf: a fully-masked row degrades to uniform
  # attention instead of NaN, and matches -inf exactly otherwise.
  bias = jnp.where(x_t_mask, jnp.float32(-1e30), jnp.float32(0.0)).reshape(B, 1, L)

  def b2(v):
    return v.reshape(1, -1)

  layers = params["layers"]

  def stack_w(name):
    return jnp.stack([lp[name] for lp in layers], axis=0)

  def stack_b(name):
    return jnp.stack([lp[name].reshape(1, -1) for lp in layers], axis=0)

  weights = [
      params["time1_w"], b2(params["time1_b"]),
      params["time2_w"], b2(params["time2_b"]),
      params["tet1_w"], b2(params["tet1_b"]),
      params["tet2_w"], b2(params["tet2_b"]),
      params["up1_w"], b2(params["up1_b"]),
      params["up2_w"], b2(params["up2_b"]),
      params["down1_w"], b2(params["down1_b"]),
      params["down2_w"], b2(params["down2_b"]),
      stack_w("in_proj_w"), stack_b("in_proj_b"),
      stack_w("out_proj_w"), stack_b("out_proj_b"),
      stack_w("lin1_w"), stack_b("lin1_b"),
      stack_w("lin2_w"), stack_b("lin2_b"),
      stack_b("ln1_g"), stack_b("ln1_b"),
      stack_b("ln2_g"), stack_b("ln2_b"),
  ]

  in_specs = [
      pl.BlockSpec((None, 1, E), lambda b: (b, 0, 0)),      # timestep embedding row
      _full_spec((L, E)),                                    # positional table
      pl.BlockSpec((None, L, Cin), lambda b: (b, 0, 0)),     # input slab
      pl.BlockSpec((None, 1, L), lambda b: (b, 0, 0)),       # key-padding bias
  ] + [_full_spec(w.shape) for w in weights]

  return pl.pallas_call(
      functools.partial(_fused_forward_kernel, num_heads=num_heads, n_layer=n_layer),
      grid=(B,),
      in_specs=in_specs,
      out_specs=pl.BlockSpec((None, L, Cout), lambda b: (b, 0, 0)),
      out_shape=jax.ShapeDtypeStruct((B, L, Cout), x.dtype),
      compiler_params=pltpu.CompilerParams(dimension_semantics=("parallel",)),
  )(te, pe, x, bias, *weights)


# --------------------------------------------------------------------------------------
# Pure-JAX reference of the same forward math (for validation only)
# --------------------------------------------------------------------------------------

def _reference_forward(params, x, x_t_mask, timesteps, *, num_heads, n_layer):
  B, L, _ = x.shape
  E = params["time1_w"].shape[0]
  Dh = E // num_heads

  def lin(a, w, b):
    return a @ w + b

  def l2n(a, axis=1):
    n = jnp.sqrt(jnp.sum(a * a, axis=axis, keepdims=True))
    return a / jnp.maximum(n, 1e-12)

  def ln(z, g, b):
    mu = jnp.mean(z, axis=-1, keepdims=True)
    var = jnp.mean((z - mu) ** 2, axis=-1, keepdims=True)
    return (z - mu) * jax.lax.rsqrt(var + 1e-5) * g + b

  emb = lin(timestep_embedding(timesteps, E), params["time1_w"], params["time1_b"])
  emb = emb * jax.nn.sigmoid(emb)
  emb = lin(emb, params["time2_w"], params["time2_b"])
  emb = lin(emb, params["tet1_w"], params["tet1_b"])
  emb = emb * jax.nn.sigmoid(emb)
  emb = lin(emb, params["tet2_w"], params["tet2_b"])
  emb = l2n(emb, axis=1)

  ex = jnp.tanh(lin(x, params["up1_w"], params["up1_b"]))
  ex = lin(ex, params["up2_w"], params["up2_b"])
  ex = l2n(ex, axis=1)
  ex = ex + emb[:, None, :]
  ex = l2n(ex, axis=1)
  h = ex + params["pe"][None, :L, :]

  bias = jnp.where(x_t_mask, -1e30, 0.0)[:, None, None, :]
  for i in range(n_layer):
    p = params["layers"][i]
    qkv = lin(h, p["in_proj_w"], p["in_proj_b"])
    q, k, v = jnp.split(qkv, 3, axis=-1)

    def heads(t):
      return t.reshape(B, L, num_heads, Dh).transpose(0, 2, 1, 3)

    q, k, v = heads(q), heads(k), heads(v)
    s = jnp.einsum("bhqd,bhkd->bhqk", q, k) / math.sqrt(Dh) + bias
    a = jax.nn.softmax(s, axis=-1)
    o = jnp.einsum("bhqk,bhkd->bhqd", a, v).transpose(0, 2, 1, 3).reshape(B, L, E)
    o = lin(o, p["out_proj_w"], p["out_proj_b"])
    h = ln(h + o, p["ln1_g"], p["ln1_b"])
    ff = jax.nn.relu(lin(h, p["lin1_w"], p["lin1_b"]))
    ff = lin(ff, p["lin2_w"], p["lin2_b"])
    h = ln(h + ff, p["ln2_g"], p["ln2_b"])

  h = l2n(h, axis=1)
  out = jnp.tanh(lin(h, params["down1_w"], params["down1_b"]))
  out = lin(out, params["down2_w"], params["down2_b"])
  out = l2n(out, axis=1)
  return out.astype(x.dtype)


# --------------------------------------------------------------------------------------
# Deterministic parameter initialization (synthetic -- shapes from the module __init__).
# Weights are stored [in, out] (already transposed vs. torch's [out, in]).
# --------------------------------------------------------------------------------------

def init_params(key, in_channels, hidden, out_channels, n_layer, ff_dim, max_len=64):
  keys = iter(jax.random.split(key, 256))

  def uni(shape, fan_in):
    s = 1.0 / math.sqrt(fan_in)
    return jax.random.uniform(next(keys), shape, jnp.float32, -s, s)

  H = hidden
  p = {
      # time_embed
      "time1_w": uni((H, 4 * H), H),        "time1_b": uni((4 * H,), H),
      "time2_w": uni((4 * H, H), 4 * H),    "time2_b": uni((H,), 4 * H),
      # time_embed_transform
      "tet1_w": uni((H, H), H),             "tet1_b": uni((H,), H),
      "tet2_w": uni((H, H), H),             "tet2_b": uni((H,), H),
      # input_up_proj
      "up1_w": uni((in_channels, H), in_channels), "up1_b": uni((H,), in_channels),
      "up2_w": uni((H, H), H),              "up2_b": uni((H,), H),
      # output_down_proj
      "down1_w": uni((H, H), H),            "down1_b": uni((H,), H),
      "down2_w": uni((H, out_channels), H), "down2_b": uni((out_channels,), H),
      # positional encoding table
      "pe": positional_encoding_table(max_len, H),
  }
  layers = []
  for _ in range(n_layer):
    layers.append({
        "in_proj_w": uni((H, 3 * H), H),  "in_proj_b": uni((3 * H,), H),
        "out_proj_w": uni((H, H), H),     "out_proj_b": uni((H,), H),
        "lin1_w": uni((H, ff_dim), H),    "lin1_b": uni((ff_dim,), H),
        "lin2_w": uni((ff_dim, H), ff_dim), "lin2_b": uni((H,), ff_dim),
        "ln1_g": jnp.ones((H,), jnp.float32), "ln1_b": jnp.zeros((H,), jnp.float32),
        "ln2_g": jnp.ones((H,), jnp.float32), "ln2_b": jnp.zeros((H,), jnp.float32),
    })
  p["layers"] = layers
  return p


# --------------------------------------------------------------------------------------
# Main
# --------------------------------------------------------------------------------------

if __name__ == "__main__":
  B, L = 2, 8
  in_channels, hidden_channels, out_channels = 16, 32, 16
  n_head, n_layer, trans_hidden_channels = 4, 2, 64

  key = jax.random.PRNGKey(0)
  kp, kx = jax.random.split(key, 2)

  params = init_params(kp, in_channels, hidden_channels, out_channels,
                       n_layer, trans_hidden_channels)

  x = jax.random.normal(kx, (B, L, in_channels), jnp.float32)          # [N, L, C]
  timesteps = jnp.array([3, 17], dtype=jnp.int32)                      # [N]
  # key-padding mask: True = padded position (last two tokens of sample 1)
  x_t_mask = jnp.zeros((B, L), dtype=bool).at[1, -2:].set(True)

  fwd = jax.jit(functools.partial(simp_transformer_forward,
                                  num_heads=n_head, n_layer=n_layer))
  out = jax.block_until_ready(fwd(params, x, x_t_mask, timesteps))

  assert out.shape == (B, L, out_channels), out.shape
  assert out.dtype == x.dtype, out.dtype
  assert bool(jnp.all(jnp.isfinite(out)))

  # Cross-check against a pure-JAX (XLA) reference of the same forward math.
  ref = _reference_forward(params, x, x_t_mask, timesteps,
                           num_heads=n_head, n_layer=n_layer)
  max_err = float(jnp.max(jnp.abs(out - ref)))
  assert max_err < 5e-2, max_err

  print("KERNEL_OK")
</pallas_src>

<mosaic_0001>
module attributes {stable_mosaic.version = 11 : i64} {
  func.func @_fused_forward_kernel(%arg0: i32, %arg1: memref<1x1x32xf32, #tpu.memory_space<vmem>>, %arg2: memref<8x32xf32, #tpu.memory_space<vmem>>, %arg3: memref<1x8x16xf32, #tpu.memory_space<vmem>>, %arg4: memref<1x1x8xf32, #tpu.memory_space<vmem>>, %arg5: memref<32x128xf32, #tpu.memory_space<vmem>>, %arg6: memref<1x128xf32, #tpu.memory_space<vmem>>, %arg7: memref<128x32xf32, #tpu.memory_space<vmem>>, %arg8: memref<1x32xf32, #tpu.memory_space<vmem>>, %arg9: memref<32x32xf32, #tpu.memory_space<vmem>>, %arg10: memref<1x32xf32, #tpu.memory_space<vmem>>, %arg11: memref<32x32xf32, #tpu.memory_space<vmem>>, %arg12: memref<1x32xf32, #tpu.memory_space<vmem>>, %arg13: memref<16x32xf32, #tpu.memory_space<vmem>>, %arg14: memref<1x32xf32, #tpu.memory_space<vmem>>, %arg15: memref<32x32xf32, #tpu.memory_space<vmem>>, %arg16: memref<1x32xf32, #tpu.memory_space<vmem>>, %arg17: memref<32x32xf32, #tpu.memory_space<vmem>>, %arg18: memref<1x32xf32, #tpu.memory_space<vmem>>, %arg19: memref<32x16xf32, #tpu.memory_space<vmem>>, %arg20: memref<1x16xf32, #tpu.memory_space<vmem>>, %arg21: memref<2x32x96xf32, #tpu.memory_space<vmem>>, %arg22: memref<2x1x96xf32, #tpu.memory_space<vmem>>, %arg23: memref<2x32x32xf32, #tpu.memory_space<vmem>>, %arg24: memref<2x1x32xf32, #tpu.memory_space<vmem>>, %arg25: memref<2x32x64xf32, #tpu.memory_space<vmem>>, %arg26: memref<2x1x64xf32, #tpu.memory_space<vmem>>, %arg27: memref<2x64x32xf32, #tpu.memory_space<vmem>>, %arg28: memref<2x1x32xf32, #tpu.memory_space<vmem>>, %arg29: memref<2x1x32xf32, #tpu.memory_space<vmem>>, %arg30: memref<2x1x32xf32, #tpu.memory_space<vmem>>, %arg31: memref<2x1x32xf32, #tpu.memory_space<vmem>>, %arg32: memref<2x1x32xf32, #tpu.memory_space<vmem>>, %arg33: memref<1x8x16xf32, #tpu.memory_space<vmem>>) attributes {dimension_semantics = [#tpu.dimension_semantics<parallel>], iteration_bounds = array<i64: 2>, scalar_prefetch = 0 : i64, scratch_operands = 0 : i64, tpu.core_type = #tpu.core_type<tc>, window_params = [{transform_indices = @transform_0, window_bounds = array<i64: 1, 1, 32>}, {pipeline_mode = #tpu.pipeline_mode<synchronous>, transform_indices = @transform_1, window_bounds = array<i64: 8, 32>}, {transform_indices = @transform_2, window_bounds = array<i64: 1, 8, 16>}, {transform_indices = @transform_3, window_bounds = array<i64: 1, 1, 8>}, {pipeline_mode = #tpu.pipeline_mode<synchronous>, transform_indices = @transform_4, window_bounds = array<i64: 32, 128>}, {pipeline_mode = #tpu.pipeline_mode<synchronous>, transform_indices = @transform_5, window_bounds = array<i64: 1, 128>}, {pipeline_mode = #tpu.pipeline_mode<synchronous>, transform_indices = @transform_6, window_bounds = array<i64: 128, 32>}, {pipeline_mode = #tpu.pipeline_mode<synchronous>, transform_indices = @transform_7, window_bounds = array<i64: 1, 32>}, {pipeline_mode = #tpu.pipeline_mode<synchronous>, transform_indices = @transform_8, window_bounds = array<i64: 32, 32>}, {pipeline_mode = #tpu.pipeline_mode<synchronous>, transform_indices = @transform_9, window_bounds = array<i64: 1, 32>}, {pipeline_mode = #tpu.pipeline_mode<synchronous>, transform_indices = @transform_10, window_bounds = array<i64: 32, 32>}, {pipeline_mode = #tpu.pipeline_mode<synchronous>, transform_indices = @transform_11, window_bounds = array<i64: 1, 32>}, {pipeline_mode = #tpu.pipeline_mode<synchronous>, transform_indices = @transform_12, window_bounds = array<i64: 16, 32>}, {pipeline_mode = #tpu.pipeline_mode<synchronous>, transform_indices = @transform_13, window_bounds = array<i64: 1, 32>}, {pipeline_mode = #tpu.pipeline_mode<synchronous>, transform_indices = @transform_14, window_bounds = array<i64: 32, 32>}, {pipeline_mode = #tpu.pipeline_mode<synchronous>, transform_indices = @transform_15, window_bounds = array<i64: 1, 32>}, {pipeline_mode = #tpu.pipeline_mode<synchronous>, transform_indices = @transform_16, window_bounds = array<i64: 32, 32>}, {pipeline_mode = #tpu.pipeline_mode<synchronous>, transform_indices = @transform_17, window_bounds = array<i64: 1, 32>}, {pipeline_mode = #tpu.pipeline_mode<synchronous>, transform_indices = @transform_18, window_bounds = array<i64: 32, 16>}, {pipeline_mode = #tpu.pipeline_mode<synchronous>, transform_indices = @transform_19, window_bounds = array<i64: 1, 16>}, {pipeline_mode = #tpu.pipeline_mode<synchronous>, transform_indices = @transform_20, window_bounds = array<i64: 2, 32, 96>}, {pipeline_mode = #tpu.pipeline_mode<synchronous>, transform_indices = @transform_21, window_bounds = array<i64: 2, 1, 96>}, {pipeline_mode = #tpu.pipeline_mode<synchronous>, transform_indices = @transform_22, window_bounds = array<i64: 2, 32, 32>}, {pipeline_mode = #tpu.pipeline_mode<synchronous>, transform_indices = @transform_23, window_bounds = array<i64: 2, 1, 32>}, {pipeline_mode = #tpu.pipeline_mode<synchronous>, transform_indices = @transform_24, window_bounds = array<i64: 2, 32, 64>}, {pipeline_mode = #tpu.pipeline_mode<synchronous>, transform_indices = @transform_25, window_bounds = array<i64: 2, 1, 64>}, {pipeline_mode = #tpu.pipeline_mode<synchronous>, transform_indices = @transform_26, window_bounds = array<i64: 2, 64, 32>}, {pipeline_mode = #tpu.pipeline_mode<synchronous>, transform_indices = @transform_27, window_bounds = array<i64: 2, 1, 32>}, {pipeline_mode = #tpu.pipeline_mode<synchronous>, transform_indices = @transform_28, window_bounds = array<i64: 2, 1, 32>}, {pipeline_mode = #tpu.pipeline_mode<synchronous>, transform_indices = @transform_29, window_bounds = array<i64: 2, 1, 32>}, {pipeline_mode = #tpu.pipeline_mode<synchronous>, transform_indices = @transform_30, window_bounds = array<i64: 2, 1, 32>}, {pipeline_mode = #tpu.pipeline_mode<synchronous>, transform_indices = @transform_31, window_bounds = array<i64: 2, 1, 32>}, {transform_indices = @transform_32, window_bounds = array<i64: 1, 8, 16>}]} {
    %c0 = arith.constant 0 : index
    %c0_0 = arith.constant 0 : index
    %c0_1 = arith.constant 0 : index
    %0 = vector.load %arg1[%c0, %c0_0, %c0_1] : memref<1x1x32xf32, #tpu.memory_space<vmem>>, vector<1x1x32xf32>
    %1 = vector.shape_cast %0 : vector<1x1x32xf32> to vector<1x32xf32>
    %2 = vector.shape_cast %1 : vector<1x32xf32> to vector<1x32xf32>
    %3 = vector.broadcast %2 : vector<1x32xf32> to vector<8x32xf32>
    %c0_2 = arith.constant 0 : index
    %c0_3 = arith.constant 0 : index
    %4 = vector.load %arg5[%c0_2, %c0_3] : memref<32x128xf32, #tpu.memory_space<vmem>>, vector<32x128xf32>
    %cst = arith.constant dense<0.000000e+00> : vector<8x128xf32>
    %5 = tpu.matmul %3, %4, %cst {dimension_numbers = #tpu.dot_dimension_numbers<[1], [0], [0], [1], [0, 0, 1, 1], [], []>} : vector<8x32xf32>, vector<32x128xf32>, vector<8x128xf32> -> vector<8x128xf32>
    %c0_4 = arith.constant 0 : index
    %c0_5 = arith.constant 0 : index
    %6 = vector.load %arg6[%c0_4, %c0_5] : memref<1x128xf32, #tpu.memory_space<vmem>>, vector<1x128xf32>
    %7 = vector.broadcast %6 : vector<1x128xf32> to vector<8x128xf32>
    %8 = arith.addf %5, %7 : vector<8x128xf32>
    %9 = arith.negf %8 : vector<8x128xf32>
    %10 = math.exp %9 : vector<8x128xf32>
    %cst_6 = arith.constant 1.000000e+00 : f32
    %11 = vector.broadcast %cst_6 : f32 to vector<8x128xf32>
    %12 = arith.addf %11, %10 : vector<8x128xf32>
    %13 = arith.divf %11, %12 : vector<8x128xf32>
    %14 = arith.mulf %8, %13 : vector<8x128xf32>
    %c0_7 = arith.constant 0 : index
    %c0_8 = arith.constant 0 : index
    %15 = vector.load %arg7[%c0_7, %c0_8] : memref<128x32xf32, #tpu.memory_space<vmem>>, vector<128x32xf32>
    %cst_9 = arith.constant dense<0.000000e+00> : vector<8x32xf32>
    %16 = tpu.matmul %14, %15, %cst_9 {dimension_numbers = #tpu.dot_dimension_numbers<[1], [0], [0], [1], [0, 0, 1, 1], [], []>} : vector<8x128xf32>, vector<128x32xf32>, vector<8x32xf32> -> vector<8x32xf32>
    %c0_10 = arith.constant 0 : index
    %c0_11 = arith.constant 0 : index
    %17 = vector.load %arg8[%c0_10, %c0_11] : memref<1x32xf32, #tpu.memory_space<vmem>>, vector<1x32xf32>
    %18 = vector.broadcast %17 : vector<1x32xf32> to vector<8x32xf32>
    %19 = arith.addf %16, %18 : vector<8x32xf32>
    %c0_12 = arith.constant 0 : index
    %c0_13 = arith.constant 0 : index
    %20 = vector.load %arg9[%c0_12, %c0_13] : memref<32x32xf32, #tpu.memory_space<vmem>>, vector<32x32xf32>
    %cst_14 = arith.constant dense<0.000000e+00> : vector<8x32xf32>
    %21 = tpu.matmul %19, %20, %cst_14 {dimension_numbers = #tpu.dot_dimension_numbers<[1], [0], [0], [1], [0, 0, 1, 1], [], []>} : vector<8x32xf32>, vector<32x32xf32>, vector<8x32xf32> -> vector<8x32xf32>
    %c0_15 = arith.constant 0 : index
    %c0_16 = arith.constant 0 : index
    %22 = vector.load %arg10[%c0_15, %c0_16] : memref<1x32xf32, #tpu.memory_space<vmem>>, vector<1x32xf32>
    %23 = vector.broadcast %22 : vector<1x32xf32> to vector<8x32xf32>
    %24 = arith.addf %21, %23 : vector<8x32xf32>
    %25 = arith.negf %24 : vector<8x32xf32>
    %26 = math.exp %25 : vector<8x32xf32>
    %cst_17 = arith.constant 1.000000e+00 : f32
    %27 = vector.broadcast %cst_17 : f32 to vector<8x32xf32>
    %28 = arith.addf %27, %26 : vector<8x32xf32>
    %29 = arith.divf %27, %28 : vector<8x32xf32>
    %30 = arith.mulf %24, %29 : vector<8x32xf32>
    %c0_18 = arith.constant 0 : index
    %c0_19 = arith.constant 0 : index
    %31 = vector.load %arg11[%c0_18, %c0_19] : memref<32x32xf32, #tpu.memory_space<vmem>>, vector<32x32xf32>
    %cst_20 = arith.constant dense<0.000000e+00> : vector<8x32xf32>
    %32 = tpu.matmul %30, %31, %cst_20 {dimension_numbers = #tpu.dot_dimension_numbers<[1], [0], [0], [1], [0, 0, 1, 1], [], []>} : vector<8x32xf32>, vector<32x32xf32>, vector<8x32xf32> -> vector<8x32xf32>
    %c0_21 = arith.constant 0 : index
    %c0_22 = arith.constant 0 : index
    %33 = vector.load %arg12[%c0_21, %c0_22] : memref<1x32xf32, #tpu.memory_space<vmem>>, vector<1x32xf32>
    %34 = vector.broadcast %33 : vector<1x32xf32> to vector<8x32xf32>
    %35 = arith.addf %32, %34 : vector<8x32xf32>
    %36 = arith.mulf %35, %35 : vector<8x32xf32>
    %cst_23 = arith.constant dense<0.000000e+00> : vector<8xf32>
    %37 = vector.multi_reduction <add>, %36, %cst_23 [1] : vector<8x32xf32> to vector<8xf32>
    %38 = vector.shape_cast %37 : vector<8xf32> to vector<8x1xf32>
    %cst_24 = arith.constant 1.000000e-24 : f32
    %39 = vector.broadcast %cst_24 : f32 to vector<8x1xf32>
    %40 = arith.maximumf %38, %39 : vector<8x1xf32>
    %41 = math.rsqrt %40 : vector<8x1xf32>
    %42 = vector.broadcast %41 : vector<8x1xf32> to vector<8x32xf32>
    %43 = arith.mulf %35, %42 : vector<8x32xf32>
    %44 = vector.extract_strided_slice %43 {offsets = [0, 0], sizes = [1, 32], strides = [1, 1]} : vector<8x32xf32> to vector<1x32xf32>
    %c0_25 = arith.constant 0 : index
    %c0_26 = arith.constant 0 : index
    %c0_27 = arith.constant 0 : index
    %45 = vector.load %arg3[%c0_25, %c0_26, %c0_27] : memref<1x8x16xf32, #tpu.memory_space<vmem>>, vector<1x8x16xf32>
    %46 = vector.shape_cast %45 : vector<1x8x16xf32> to vector<8x16xf32>
    %c0_28 = arith.constant 0 : index
    %c0_29 = arith.constant 0 : index
    %47 = vector.load %arg13[%c0_28, %c0_29] : memref<16x32xf32, #tpu.memory_space<vmem>>, vector<16x32xf32>
    %cst_30 = arith.constant dense<0.000000e+00> : vector<8x32xf32>
    %48 = tpu.matmul %46, %47, %cst_30 {dimension_numbers = #tpu.dot_dimension_numbers<[1], [0], [0], [1], [0, 0, 1, 1], [], []>} : vector<8x16xf32>, vector<16x32xf32>, vector<8x32xf32> -> vector<8x32xf32>
    %c0_31 = arith.constant 0 : index
    %c0_32 = arith.constant 0 : index
    %49 = vector.load %arg14[%c0_31, %c0_32] : memref<1x32xf32, #tpu.memory_space<vmem>>, vector<1x32xf32>
    %50 = vector.broadcast %49 : vector<1x32xf32> to vector<8x32xf32>
    %51 = arith.addf %48, %50 : vector<8x32xf32>
    %52 = math.tanh %51 : vector<8x32xf32>
    %c0_33 = arith.constant 0 : index
    %c0_34 = arith.constant 0 : index
    %53 = vector.load %arg15[%c0_33, %c0_34] : memref<32x32xf32, #tpu.memory_space<vmem>>, vector<32x32xf32>
    %cst_35 = arith.constant dense<0.000000e+00> : vector<8x32xf32>
    %54 = tpu.matmul %52, %53, %cst_35 {dimension_numbers = #tpu.dot_dimension_numbers<[1], [0], [0], [1], [0, 0, 1, 1], [], []>} : vector<8x32xf32>, vector<32x32xf32>, vector<8x32xf32> -> vector<8x32xf32>
    %c0_36 = arith.constant 0 : index
    %c0_37 = arith.constant 0 : index
    %55 = vector.load %arg16[%c0_36, %c0_37] : memref<1x32xf32, #tpu.memory_space<vmem>>, vector<1x32xf32>
    %56 = vector.broadcast %55 : vector<1x32xf32> to vector<8x32xf32>
    %57 = arith.addf %54, %56 : vector<8x32xf32>
    %58 = arith.mulf %57, %57 : vector<8x32xf32>
    %cst_38 = arith.constant dense<0.000000e+00> : vector<32xf32>
    %59 = vector.multi_reduction <add>, %58, %cst_38 [0] : vector<8x32xf32> to vector<32xf32>
    %60 = vector.shape_cast %59 : vector<32xf32> to vector<1x32xf32>
    %cst_39 = arith.constant 1.000000e-24 : f32
    %61 = vector.broadcast %cst_39 : f32 to vector<1x32xf32>
    %62 = arith.maximumf %60, %61 : vector<1x32xf32>
    %63 = math.rsqrt %62 : vector<1x32xf32>
    %64 = vector.broadcast %63 : vector<1x32xf32> to vector<8x32xf32>
    %65 = arith.mulf %57, %64 : vector<8x32xf32>
    %66 = vector.broadcast %44 : vector<1x32xf32> to vector<8x32xf32>
    %67 = arith.addf %65, %66 : vector<8x32xf32>
    %68 = arith.mulf %67, %67 : vector<8x32xf32>
    %cst_40 = arith.constant dense<0.000000e+00> : vector<32xf32>
    %69 = vector.multi_reduction <add>, %68, %cst_40 [0] : vector<8x32xf32> to vector<32xf32>
    %70 = vector.shape_cast %69 : vector<32xf32> to vector<1x32xf32>
    %cst_41 = arith.constant 1.000000e-24 : f32
    %71 = vector.broadcast %cst_41 : f32 to vector<1x32xf32>
    %72 = arith.maximumf %70, %71 : vector<1x32xf32>
    %73 = math.rsqrt %72 : vector<1x32xf32>
    %74 = vector.broadcast %73 : vector<1x32xf32> to vector<8x32xf32>
    %75 = arith.mulf %67, %74 : vector<8x32xf32>
    %c0_42 = arith.constant 0 : index
    %c0_43 = arith.constant 0 : index
    %76 = vector.load %arg2[%c0_42, %c0_43] : memref<8x32xf32, #tpu.memory_space<vmem>>, vector<8x32xf32>
    %77 = arith.addf %75, %76 : vector<8x32xf32>
    %c0_44 = arith.constant 0 : index
    %c0_45 = arith.constant 0 : index
    %c0_46 = arith.constant 0 : index
    %78 = vector.load %arg4[%c0_44, %c0_45, %c0_46] : memref<1x1x8xf32, #tpu.memory_space<vmem>>, vector<1x1x8xf32>
    %79 = vector.shape_cast %78 : vector<1x1x8xf32> to vector<1x8xf32>
    %c0_47 = arith.constant 0 : index
    %c0_48 = arith.constant 0 : index
    %c0_49 = arith.constant 0 : index
    %80 = vector.load %arg21[%c0_47, %c0_48, %c0_49] : memref<2x32x96xf32, #tpu.memory_space<vmem>>, vector<1x32x96xf32>
    %81 = vector.shape_cast %80 : vector<1x32x96xf32> to vector<32x96xf32>
    %cst_50 = arith.constant dense<0.000000e+00> : vector<8x96xf32>
    %82 = tpu.matmul %77, %81, %cst_50 {dimension_numbers = #tpu.dot_dimension_numbers<[1], [0], [0], [1], [0, 0, 1, 1], [], []>} : vector<8x32xf32>, vector<32x96xf32>, vector<8x96xf32> -> vector<8x96xf32>
    %c0_51 = arith.constant 0 : index
    %c0_52 = arith.constant 0 : index
    %c0_53 = arith.constant 0 : index
    %83 = vector.load %arg22[%c0_51, %c0_52, %c0_53] : memref<2x1x96xf32, #tpu.memory_space<vmem>>, vector<1x1x96xf32>
    %84 = vector.shape_cast %83 : vector<1x1x96xf32> to vector<1x96xf32>
    %85 = vector.broadcast %84 : vector<1x96xf32> to vector<8x96xf32>
    %86 = arith.addf %82, %85 : vector<8x96xf32>
    %c0_54 = arith.constant 0 : index
    %c0_55 = arith.constant 0 : index
    %c0_56 = arith.constant 0 : index
    %87 = vector.load %arg23[%c0_54, %c0_55, %c0_56] : memref<2x32x32xf32, #tpu.memory_space<vmem>>, vector<1x32x32xf32>
    %88 = vector.shape_cast %87 : vector<1x32x32xf32> to vector<32x32xf32>
    %89 = vector.extract_strided_slice %86 {offsets = [0, 0], sizes = [8, 8], strides = [1, 1]} : vector<8x96xf32> to vector<8x8xf32>
    %90 = vector.extract_strided_slice %86 {offsets = [0, 32], sizes = [8, 8], strides = [1, 1]} : vector<8x96xf32> to vector<8x8xf32>
    %91 = vector.extract_strided_slice %86 {offsets = [0, 64], sizes = [8, 8], strides = [1, 1]} : vector<8x96xf32> to vector<8x8xf32>
    %92 = tpu.transpose %90, [1, 0] : vector<8x8xf32> -> vector<8x8xf32>
    %cst_57 = arith.constant dense<0.000000e+00> : vector<8x8xf32>
    %93 = tpu.matmul %89, %92, %cst_57 {dimension_numbers = #tpu.dot_dimension_numbers<[1], [0], [0], [1], [0, 0, 1, 1], [], []>} : vector<8x8xf32>, vector<8x8xf32>, vector<8x8xf32> -> vector<8x8xf32>
    %cst_58 = arith.constant 0.353553385 : f32
    %94 = vector.broadcast %cst_58 : f32 to vector<8x8xf32>
    %95 = arith.mulf %93, %94 : vector<8x8xf32>
    %96 = vector.broadcast %79 : vector<1x8xf32> to vector<8x8xf32>
    %97 = arith.addf %95, %96 : vector<8x8xf32>
    %cst_59 = arith.constant dense<0xFF800000> : vector<8xf32>
    %98 = vector.multi_reduction <maximumf>, %97, %cst_59 [1] : vector<8x8xf32> to vector<8xf32>
    %99 = vector.shape_cast %98 : vector<8xf32> to vector<8x1xf32>
    %100 = vector.broadcast %99 : vector<8x1xf32> to vector<8x8xf32>
    %101 = arith.subf %97, %100 : vector<8x8xf32>
    %102 = math.exp %101 : vector<8x8xf32>
    %cst_60 = arith.constant dense<0.000000e+00> : vector<8xf32>
    %103 = vector.multi_reduction <add>, %102, %cst_60 [1] : vector<8x8xf32> to vector<8xf32>
    %104 = vector.shape_cast %103 : vector<8xf32> to vector<8x1xf32>
    %105 = tpu.reciprocal %104 {approx = true} : vector<8x1xf32> -> vector<8x1xf32>
    %106 = vector.broadcast %105 : vector<8x1xf32> to vector<8x8xf32>
    %107 = arith.mulf %102, %106 : vector<8x8xf32>
    %cst_61 = arith.constant dense<0.000000e+00> : vector<8x8xf32>
    %108 = tpu.matmul %107, %91, %cst_61 {dimension_numbers = #tpu.dot_dimension_numbers<[1], [0], [0], [1], [0, 0, 1, 1], [], []>} : vector<8x8xf32>, vector<8x8xf32>, vector<8x8xf32> -> vector<8x8xf32>
    %109 = vector.extract_strided_slice %88 {offsets = [0, 0], sizes = [8, 32], strides = [1, 1]} : vector<32x32xf32> to vector<8x32xf32>
    %cst_62 = arith.constant dense<0.000000e+00> : vector<8x32xf32>
    %110 = tpu.matmul %108, %109, %cst_62 {dimension_numbers = #tpu.dot_dimension_numbers<[1], [0], [0], [1], [0, 0, 1, 1], [], []>} : vector<8x8xf32>, vector<8x32xf32>, vector<8x32xf32> -> vector<8x32xf32>
    %111 = vector.extract_strided_slice %86 {offsets = [0, 8], sizes = [8, 8], strides = [1, 1]} : vector<8x96xf32> to vector<8x8xf32>
    %112 = vector.extract_strided_slice %86 {offsets = [0, 40], sizes = [8, 8], strides = [1, 1]} : vector<8x96xf32> to vector<8x8xf32>
    %113 = vector.extract_strided_slice %86 {offsets = [0, 72], sizes = [8, 8], strides = [1, 1]} : vector<8x96xf32> to vector<8x8xf32>
    %114 = tpu.transpose %112, [1, 0] : vector<8x8xf32> -> vector<8x8xf32>
    %cst_63 = arith.constant dense<0.000000e+00> : vector<8x8xf32>
    %115 = tpu.matmul %111, %114, %cst_63 {dimension_numbers = #tpu.dot_dimension_numbers<[1], [0], [0], [1], [0, 0, 1, 1], [], []>} : vector<8x8xf32>, vector<8x8xf32>, vector<8x8xf32> -> vector<8x8xf32>
    %cst_64 = arith.constant 0.353553385 : f32
    %116 = vector.broadcast %cst_64 : f32 to vector<8x8xf32>
    %117 = arith.mulf %115, %116 : vector<8x8xf32>
    %118 = vector.broadcast %79 : vector<1x8xf32> to vector<8x8xf32>
    %119 = arith.addf %117, %118 : vector<8x8xf32>
    %cst_65 = arith.constant dense<0xFF800000> : vector<8xf32>
    %120 = vector.multi_reduction <maximumf>, %119, %cst_65 [1] : vector<8x8xf32> to vector<8xf32>
    %121 = vector.shape_cast %120 : vector<8xf32> to vector<8x1xf32>
    %122 = vector.broadcast %121 : vector<8x1xf32> to vector<8x8xf32>
    %123 = arith.subf %119, %122 : vector<8x8xf32>
    %124 = math.exp %123 : vector<8x8xf32>
    %cst_66 = arith.constant dense<0.000000e+00> : vector<8xf32>
    %125 = vector.multi_reduction <add>, %124, %cst_66 [1] : vector<8x8xf32> to vector<8xf32>
    %126 = vector.shape_cast %125 : vector<8xf32> to vector<8x1xf32>
    %127 = tpu.reciprocal %126 {approx = true} : vector<8x1xf32> -> vector<8x1xf32>
    %128 = vector.broadcast %127 : vector<8x1xf32> to vector<8x8xf32>
    %129 = arith.mulf %124, %128 : vector<8x8xf32>
    %cst_67 = arith.constant dense<0.000000e+00> : vector<8x8xf32>
    %130 = tpu.matmul %129, %113, %cst_67 {dimension_numbers = #tpu.dot_dimension_numbers<[1], [0], [0], [1], [0, 0, 1, 1], [], []>} : vector<8x8xf32>, vector<8x8xf32>, vector<8x8xf32> -> vector<8x8xf32>
    %131 = vector.extract_strided_slice %88 {offsets = [8, 0], sizes = [8, 32], strides = [1, 1]} : vector<32x32xf32> to vector<8x32xf32>
    %cst_68 = arith.constant dense<0.000000e+00> : vector<8x32xf32>
    %132 = tpu.matmul %130, %131, %cst_68 {dimension_numbers = #tpu.dot_dimension_numbers<[1], [0], [0], [1], [0, 0, 1, 1], [], []>} : vector<8x8xf32>, vector<8x32xf32>, vector<8x32xf32> -> vector<8x32xf32>
    %133 = arith.addf %110, %132 : vector<8x32xf32>
    %134 = vector.extract_strided_slice %86 {offsets = [0, 16], sizes = [8, 8], strides = [1, 1]} : vector<8x96xf32> to vector<8x8xf32>
    %135 = vector.extract_strided_slice %86 {offsets = [0, 48], sizes = [8, 8], strides = [1, 1]} : vector<8x96xf32> to vector<8x8xf32>
    %136 = vector.extract_strided_slice %86 {offsets = [0, 80], sizes = [8, 8], strides = [1, 1]} : vector<8x96xf32> to vector<8x8xf32>
    %137 = tpu.transpose %135, [1, 0] : vector<8x8xf32> -> vector<8x8xf32>
    %cst_69 = arith.constant dense<0.000000e+00> : vector<8x8xf32>
    %138 = tpu.matmul %134, %137, %cst_69 {dimension_numbers = #tpu.dot_dimension_numbers<[1], [0], [0], [1], [0, 0, 1, 1], [], []>} : vector<8x8xf32>, vector<8x8xf32>, vector<8x8xf32> -> vector<8x8xf32>
    %cst_70 = arith.constant 0.353553385 : f32
    %139 = vector.broadcast %cst_70 : f32 to vector<8x8xf32>
    %140 = arith.mulf %138, %139 : vector<8x8xf32>
    %141 = vector.broadcast %79 : vector<1x8xf32> to vector<8x8xf32>
    %142 = arith.addf %140, %141 : vector<8x8xf32>
    %cst_71 = arith.constant dense<0xFF800000> : vector<8xf32>
    %143 = vector.multi_reduction <maximumf>, %142, %cst_71 [1] : vector<8x8xf32> to vector<8xf32>
    %144 = vector.shape_cast %143 : vector<8xf32> to vector<8x1xf32>
    %145 = vector.broadcast %144 : vector<8x1xf32> to vector<8x8xf32>
    %146 = arith.subf %142, %145 : vector<8x8xf32>
    %147 = math.exp %146 : vector<8x8xf32>
    %cst_72 = arith.constant dense<0.000000e+00> : vector<8xf32>
    %148 = vector.multi_reduction <add>, %147, %cst_72 [1] : vector<8x8xf32> to vector<8xf32>
    %149 = vector.shape_cast %148 : vector<8xf32> to vector<8x1xf32>
    %150 = tpu.reciprocal %149 {approx = true} : vector<8x1xf32> -> vector<8x1xf32>
    %151 = vector.broadcast %150 : vector<8x1xf32> to vector<8x8xf32>
    %152 = arith.mulf %147, %151 : vector<8x8xf32>
    %cst_73 = arith.constant dense<0.000000e+00> : vector<8x8xf32>
    %153 = tpu.matmul %152, %136, %cst_73 {dimension_numbers = #tpu.dot_dimension_numbers<[1], [0], [0], [1], [0, 0, 1, 1], [], []>} : vector<8x8xf32>, vector<8x8xf32>, vector<8x8xf32> -> vector<8x8xf32>
    %154 = vector.extract_strided_slice %88 {offsets = [16, 0], sizes = [8, 32], strides = [1, 1]} : vector<32x32xf32> to vector<8x32xf32>
    %cst_74 = arith.constant dense<0.000000e+00> : vector<8x32xf32>
    %155 = tpu.matmul %153, %154, %cst_74 {dimension_numbers = #tpu.dot_dimension_numbers<[1], [0], [0], [1], [0, 0, 1, 1], [], []>} : vector<8x8xf32>, vector<8x32xf32>, vector<8x32xf32> -> vector<8x32xf32>
    %156 = arith.addf %133, %155 : vector<8x32xf32>
    %157 = vector.extract_strided_slice %86 {offsets = [0, 24], sizes = [8, 8], strides = [1, 1]} : vector<8x96xf32> to vector<8x8xf32>
    %158 = vector.extract_strided_slice %86 {offsets = [0, 56], sizes = [8, 8], strides = [1, 1]} : vector<8x96xf32> to vector<8x8xf32>
    %159 = vector.extract_strided_slice %86 {offsets = [0, 88], sizes = [8, 8], strides = [1, 1]} : vector<8x96xf32> to vector<8x8xf32>
    %160 = tpu.transpose %158, [1, 0] : vector<8x8xf32> -> vector<8x8xf32>
    %cst_75 = arith.constant dense<0.000000e+00> : vector<8x8xf32>
    %161 = tpu.matmul %157, %160, %cst_75 {dimension_numbers = #tpu.dot_dimension_numbers<[1], [0], [0], [1], [0, 0, 1, 1], [], []>} : vector<8x8xf32>, vector<8x8xf32>, vector<8x8xf32> -> vector<8x8xf32>
    %cst_76 = arith.constant 0.353553385 : f32
    %162 = vector.broadcast %cst_76 : f32 to vector<8x8xf32>
    %163 = arith.mulf %161, %162 : vector<8x8xf32>
    %164 = vector.broadcast %79 : vector<1x8xf32> to vector<8x8xf32>
    %165 = arith.addf %163, %164 : vector<8x8xf32>
    %cst_77 = arith.constant dense<0xFF800000> : vector<8xf32>
    %166 = vector.multi_reduction <maximumf>, %165, %cst_77 [1] : vector<8x8xf32> to vector<8xf32>
    %167 = vector.shape_cast %166 : vector<8xf32> to vector<8x1xf32>
    %168 = vector.broadcast %167 : vector<8x1xf32> to vector<8x8xf32>
    %169 = arith.subf %165, %168 : vector<8x8xf32>
    %170 = math.exp %169 : vector<8x8xf32>
    %cst_78 = arith.constant dense<0.000000e+00> : vector<8xf32>
    %171 = vector.multi_reduction <add>, %170, %cst_78 [1] : vector<8x8xf32> to vector<8xf32>
    %172 = vector.shape_cast %171 : vector<8xf32> to vector<8x1xf32>
    %173 = tpu.reciprocal %172 {approx = true} : vector<8x1xf32> -> vector<8x1xf32>
    %174 = vector.broadcast %173 : vector<8x1xf32> to vector<8x8xf32>
    %175 = arith.mulf %170, %174 : vector<8x8xf32>
    %cst_79 = arith.constant dense<0.000000e+00> : vector<8x8xf32>
    %176 = tpu.matmul %175, %159, %cst_79 {dimension_numbers = #tpu.dot_dimension_numbers<[1], [0], [0], [1], [0, 0, 1, 1], [], []>} : vector<8x8xf32>, vector<8x8xf32>, vector<8x8xf32> -> vector<8x8xf32>
    %177 = vector.extract_strided_slice %88 {offsets = [24, 0], sizes = [8, 32], strides = [1, 1]} : vector<32x32xf32> to vector<8x32xf32>
    %cst_80 = arith.constant dense<0.000000e+00> : vector<8x32xf32>
    %178 = tpu.matmul %176, %177, %cst_80 {dimension_numbers = #tpu.dot_dimension_numbers<[1], [0], [0], [1], [0, 0, 1, 1], [], []>} : vector<8x8xf32>, vector<8x32xf32>, vector<8x32xf32> -> vector<8x32xf32>
    %179 = arith.addf %156, %178 : vector<8x32xf32>
    %c0_81 = arith.constant 0 : index
    %c0_82 = arith.constant 0 : index
    %c0_83 = arith.constant 0 : index
    %180 = vector.load %arg24[%c0_81, %c0_82, %c0_83] : memref<2x1x32xf32, #tpu.memory_space<vmem>>, vector<1x1x32xf32>
    %181 = vector.shape_cast %180 : vector<1x1x32xf32> to vector<1x32xf32>
    %182 = vector.broadcast %181 : vector<1x32xf32> to vector<8x32xf32>
    %183 = arith.addf %179, %182 : vector<8x32xf32>
    %184 = arith.addf %77, %183 : vector<8x32xf32>
    %c0_84 = arith.constant 0 : index
    %c0_85 = arith.constant 0 : index
    %c0_86 = arith.constant 0 : index
    %185 = vector.load %arg29[%c0_84, %c0_85, %c0_86] : memref<2x1x32xf32, #tpu.memory_space<vmem>>, vector<1x1x32xf32>
    %186 = vector.shape_cast %185 : vector<1x1x32xf32> to vector<1x32xf32>
    %c0_87 = arith.constant 0 : index
    %c0_88 = arith.constant 0 : index
    %c0_89 = arith.constant 0 : index
    %187 = vector.load %arg30[%c0_87, %c0_88, %c0_89] : memref<2x1x32xf32, #tpu.memory_space<vmem>>, vector<1x1x32xf32>
    %188 = vector.shape_cast %187 : vector<1x1x32xf32> to vector<1x32xf32>
    %cst_90 = arith.constant dense<0.000000e+00> : vector<8xf32>
    %189 = vector.multi_reduction <add>, %184, %cst_90 [1] : vector<8x32xf32> to vector<8xf32>
    %190 = vector.shape_cast %189 : vector<8xf32> to vector<8x1xf32>
    %cst_91 = arith.constant 3.200000e+01 : f32
    %191 = vector.broadcast %cst_91 : f32 to vector<8x1xf32>
    %192 = arith.divf %190, %191 : vector<8x1xf32>
    %193 = vector.broadcast %192 : vector<8x1xf32> to vector<8x32xf32>
    %194 = arith.subf %184, %193 : vector<8x32xf32>
    %195 = arith.mulf %194, %194 : vector<8x32xf32>
    %cst_92 = arith.constant dense<0.000000e+00> : vector<8xf32>
    %196 = vector.multi_reduction <add>, %195, %cst_92 [1] : vector<8x32xf32> to vector<8xf32>
    %197 = vector.shape_cast %196 : vector<8xf32> to vector<8x1xf32>
    %cst_93 = arith.constant 3.200000e+01 : f32
    %198 = vector.broadcast %cst_93 : f32 to vector<8x1xf32>
    %199 = arith.divf %197, %198 : vector<8x1xf32>
    %cst_94 = arith.constant 9.99999974E-6 : f32
    %200 = vector.broadcast %cst_94 : f32 to vector<8x1xf32>
    %201 = arith.addf %199, %200 : vector<8x1xf32>
    %202 = math.rsqrt %201 : vector<8x1xf32>
    %203 = vector.broadcast %202 : vector<8x1xf32> to vector<8x32xf32>
    %204 = arith.mulf %194, %203 : vector<8x32xf32>
    %205 = vector.broadcast %186 : vector<1x32xf32> to vector<8x32xf32>
    %206 = arith.mulf %204, %205 : vector<8x32xf32>
    %207 = vector.broadcast %188 : vector<1x32xf32> to vector<8x32xf32>
    %208 = arith.addf %206, %207 : vector<8x32xf32>
    %c0_95 = arith.constant 0 : index
    %c0_96 = arith.constant 0 : index
    %c0_97 = arith.constant 0 : index
    %209 = vector.load %arg25[%c0_95, %c0_96, %c0_97] : memref<2x32x64xf32, #tpu.memory_space<vmem>>, vector<1x32x64xf32>
    %210 = vector.shape_cast %209 : vector<1x32x64xf32> to vector<32x64xf32>
    %cst_98 = arith.constant dense<0.000000e+00> : vector<8x64xf32>
    %211 = tpu.matmul %208, %210, %cst_98 {dimension_numbers = #tpu.dot_dimension_numbers<[1], [0], [0], [1], [0, 0, 1, 1], [], []>} : vector<8x32xf32>, vector<32x64xf32>, vector<8x64xf32> -> vector<8x64xf32>
    %c0_99 = arith.constant 0 : index
    %c0_100 = arith.constant 0 : index
    %c0_101 = arith.constant 0 : index
    %212 = vector.load %arg26[%c0_99, %c0_100, %c0_101] : memref<2x1x64xf32, #tpu.memory_space<vmem>>, vector<1x1x64xf32>
    %213 = vector.shape_cast %212 : vector<1x1x64xf32> to vector<1x64xf32>
    %214 = vector.broadcast %213 : vector<1x64xf32> to vector<8x64xf32>
    %215 = arith.addf %211, %214 : vector<8x64xf32>
    %cst_102 = arith.constant 0.000000e+00 : f32
    %216 = vector.broadcast %cst_102 : f32 to vector<8x64xf32>
    %217 = arith.maximumf %215, %216 : vector<8x64xf32>
    %c0_103 = arith.constant 0 : index
    %c0_104 = arith.constant 0 : index
    %c0_105 = arith.constant 0 : index
    %218 = vector.load %arg27[%c0_103, %c0_104, %c0_105] : memref<2x64x32xf32, #tpu.memory_space<vmem>>, vector<1x64x32xf32>
    %219 = vector.shape_cast %218 : vector<1x64x32xf32> to vector<64x32xf32>
    %cst_106 = arith.constant dense<0.000000e+00> : vector<8x32xf32>
    %220 = tpu.matmul %217, %219, %cst_106 {dimension_numbers = #tpu.dot_dimension_numbers<[1], [0], [0], [1], [0, 0, 1, 1], [], []>} : vector<8x64xf32>, vector<64x32xf32>, vector<8x32xf32> -> vector<8x32xf32>
    %c0_107 = arith.constant 0 : index
    %c0_108 = arith.constant 0 : index
    %c0_109 = arith.constant 0 : index
    %221 = vector.load %arg28[%c0_107, %c0_108, %c0_109] : memref<2x1x32xf32, #tpu.memory_space<vmem>>, vector<1x1x32xf32>
    %222 = vector.shape_cast %221 : vector<1x1x32xf32> to vector<1x32xf32>
    %223 = vector.broadcast %222 : vector<1x32xf32> to vector<8x32xf32>
    %224 = arith.addf %220, %223 : vector<8x32xf32>
    %225 = arith.addf %208, %224 : vector<8x32xf32>
    %c0_110 = arith.constant 0 : index
    %c0_111 = arith.constant 0 : index
    %c0_112 = arith.constant 0 : index
    %226 = vector.load %arg31[%c0_110, %c0_111, %c0_112] : memref<2x1x32xf32, #tpu.memory_space<vmem>>, vector<1x1x32xf32>
    %227 = vector.shape_cast %226 : vector<1x1x32xf32> to vector<1x32xf32>
    %c0_113 = arith.constant 0 : index
    %c0_114 = arith.constant 0 : index
    %c0_115 = arith.constant 0 : index
    %228 = vector.load %arg32[%c0_113, %c0_114, %c0_115] : memref<2x1x32xf32, #tpu.memory_space<vmem>>, vector<1x1x32xf32>
    %229 = vector.shape_cast %228 : vector<1x1x32xf32> to vector<1x32xf32>
    %cst_116 = arith.constant dense<0.000000e+00> : vector<8xf32>
    %230 = vector.multi_reduction <add>, %225, %cst_116 [1] : vector<8x32xf32> to vector<8xf32>
    %231 = vector.shape_cast %230 : vector<8xf32> to vector<8x1xf32>
    %cst_117 = arith.constant 3.200000e+01 : f32
    %232 = vector.broadcast %cst_117 : f32 to vector<8x1xf32>
    %233 = arith.divf %231, %232 : vector<8x1xf32>
    %234 = vector.broadcast %233 : vector<8x1xf32> to vector<8x32xf32>
    %235 = arith.subf %225, %234 : vector<8x32xf32>
    %236 = arith.mulf %235, %235 : vector<8x32xf32>
    %cst_118 = arith.constant dense<0.000000e+00> : vector<8xf32>
    %237 = vector.multi_reduction <add>, %236, %cst_118 [1] : vector<8x32xf32> to vector<8xf32>
    %238 = vector.shape_cast %237 : vector<8xf32> to vector<8x1xf32>
    %cst_119 = arith.constant 3.200000e+01 : f32
    %239 = vector.broadcast %cst_119 : f32 to vector<8x1xf32>
    %240 = arith.divf %238, %239 : vector<8x1xf32>
    %cst_120 = arith.constant 9.99999974E-6 : f32
    %241 = vector.broadcast %cst_120 : f32 to vector<8x1xf32>
    %242 = arith.addf %240, %241 : vector<8x1xf32>
    %243 = math.rsqrt %242 : vector<8x1xf32>
    %244 = vector.broadcast %243 : vector<8x1xf32> to vector<8x32xf32>
    %245 = arith.mulf %235, %244 : vector<8x32xf32>
    %246 = vector.broadcast %227 : vector<1x32xf32> to vector<8x32xf32>
    %247 = arith.mulf %245, %246 : vector<8x32xf32>
    %248 = vector.broadcast %229 : vector<1x32xf32> to vector<8x32xf32>
    %249 = arith.addf %247, %248 : vector<8x32xf32>
    %c1 = arith.constant 1 : index
    %c0_121 = arith.constant 0 : index
    %c0_122 = arith.constant 0 : index
    %250 = vector.load %arg21[%c1, %c0_121, %c0_122] : memref<2x32x96xf32, #tpu.memory_space<vmem>>, vector<1x32x96xf32>
    %251 = vector.shape_cast %250 : vector<1x32x96xf32> to vector<32x96xf32>
    %cst_123 = arith.constant dense<0.000000e+00> : vector<8x96xf32>
    %252 = tpu.matmul %249, %251, %cst_123 {dimension_numbers = #tpu.dot_dimension_numbers<[1], [0], [0], [1], [0, 0, 1, 1], [], []>} : vector<8x32xf32>, vector<32x96xf32>, vector<8x96xf32> -> vector<8x96xf32>
    %c1_124 = arith.constant 1 : index
    %c0_125 = arith.constant 0 : index
    %c0_126 = arith.constant 0 : index
    %253 = vector.load %arg22[%c1_124, %c0_125, %c0_126] : memref<2x1x96xf32, #tpu.memory_space<vmem>>, vector<1x1x96xf32>
    %254 = vector.shape_cast %253 : vector<1x1x96xf32> to vector<1x96xf32>
    %255 = vector.broadcast %254 : vector<1x96xf32> to vector<8x96xf32>
    %256 = arith.addf %252, %255 : vector<8x96xf32>
    %c1_127 = arith.constant 1 : index
    %c0_128 = arith.constant 0 : index
    %c0_129 = arith.constant 0 : index
    %257 = vector.load %arg23[%c1_127, %c0_128, %c0_129] : memref<2x32x32xf32, #tpu.memory_space<vmem>>, vector<1x32x32xf32>
    %258 = vector.shape_cast %257 : vector<1x32x32xf32> to vector<32x32xf32>
    %259 = vector.extract_strided_slice %256 {offsets = [0, 0], sizes = [8, 8], strides = [1, 1]} : vector<8x96xf32> to vector<8x8xf32>
    %260 = vector.extract_strided_slice %256 {offsets = [0, 32], sizes = [8, 8], strides = [1, 1]} : vector<8x96xf32> to vector<8x8xf32>
    %261 = vector.extract_strided_slice %256 {offsets = [0, 64], sizes = [8, 8], strides = [1, 1]} : vector<8x96xf32> to vector<8x8xf32>
    %262 = tpu.transpose %260, [1, 0] : vector<8x8xf32> -> vector<8x8xf32>
    %cst_130 = arith.constant dense<0.000000e+00> : vector<8x8xf32>
    %263 = tpu.matmul %259, %262, %cst_130 {dimension_numbers = #tpu.dot_dimension_numbers<[1], [0], [0], [1], [0, 0, 1, 1], [], []>} : vector<8x8xf32>, vector<8x8xf32>, vector<8x8xf32> -> vector<8x8xf32>
    %cst_131 = arith.constant 0.353553385 : f32
    %264 = vector.broadcast %cst_131 : f32 to vector<8x8xf32>
    %265 = arith.mulf %263, %264 : vector<8x8xf32>
    %266 = vector.broadcast %79 : vector<1x8xf32> to vector<8x8xf32>
    %267 = arith.addf %265, %266 : vector<8x8xf32>
    %cst_132 = arith.constant dense<0xFF800000> : vector<8xf32>
    %268 = vector.multi_reduction <maximumf>, %267, %cst_132 [1] : vector<8x8xf32> to vector<8xf32>
    %269 = vector.shape_cast %268 : vector<8xf32> to vector<8x1xf32>
    %270 = vector.broadcast %269 : vector<8x1xf32> to vector<8x8xf32>
    %271 = arith.subf %267, %270 : vector<8x8xf32>
    %272 = math.exp %271 : vector<8x8xf32>
    %cst_133 = arith.constant dense<0.000000e+00> : vector<8xf32>
    %273 = vector.multi_reduction <add>, %272, %cst_133 [1] : vector<8x8xf32> to vector<8xf32>
    %274 = vector.shape_cast %273 : vector<8xf32> to vector<8x1xf32>
    %275 = tpu.reciprocal %274 {approx = true} : vector<8x1xf32> -> vector<8x1xf32>
    %276 = vector.broadcast %275 : vector<8x1xf32> to vector<8x8xf32>
    %277 = arith.mulf %272, %276 : vector<8x8xf32>
    %cst_134 = arith.constant dense<0.000000e+00> : vector<8x8xf32>
    %278 = tpu.matmul %277, %261, %cst_134 {dimension_numbers = #tpu.dot_dimension_numbers<[1], [0], [0], [1], [0, 0, 1, 1], [], []>} : vector<8x8xf32>, vector<8x8xf32>, vector<8x8xf32> -> vector<8x8xf32>
    %279 = vector.extract_strided_slice %258 {offsets = [0, 0], sizes = [8, 32], strides = [1, 1]} : vector<32x32xf32> to vector<8x32xf32>
    %cst_135 = arith.constant dense<0.000000e+00> : vector<8x32xf32>
    %280 = tpu.matmul %278, %279, %cst_135 {dimension_numbers = #tpu.dot_dimension_numbers<[1], [0], [0], [1], [0, 0, 1, 1], [], []>} : vector<8x8xf32>, vector<8x32xf32>, vector<8x32xf32> -> vector<8x32xf32>
    %281 = vector.extract_strided_slice %256 {offsets = [0, 8], sizes = [8, 8], strides = [1, 1]} : vector<8x96xf32> to vector<8x8xf32>
    %282 = vector.extract_strided_slice %256 {offsets = [0, 40], sizes = [8, 8], strides = [1, 1]} : vector<8x96xf32> to vector<8x8xf32>
    %283 = vector.extract_strided_slice %256 {offsets = [0, 72], sizes = [8, 8], strides = [1, 1]} : vector<8x96xf32> to vector<8x8xf32>
    %284 = tpu.transpose %282, [1, 0] : vector<8x8xf32> -> vector<8x8xf32>
    %cst_136 = arith.constant dense<0.000000e+00> : vector<8x8xf32>
    %285 = tpu.matmul %281, %284, %cst_136 {dimension_numbers = #tpu.dot_dimension_numbers<[1], [0], [0], [1], [0, 0, 1, 1], [], []>} : vector<8x8xf32>, vector<8x8xf32>, vector<8x8xf32> -> vector<8x8xf32>
    %cst_137 = arith.constant 0.353553385 : f32
    %286 = vector.broadcast %cst_137 : f32 to vector<8x8xf32>
    %287 = arith.mulf %285, %286 : vector<8x8xf32>
    %288 = vector.broadcast %79 : vector<1x8xf32> to vector<8x8xf32>
    %289 = arith.addf %287, %288 : vector<8x8xf32>
    %cst_138 = arith.constant dense<0xFF800000> : vector<8xf32>
    %290 = vector.multi_reduction <maximumf>, %289, %cst_138 [1] : vector<8x8xf32> to vector<8xf32>
    %291 = vector.shape_cast %290 : vector<8xf32> to vector<8x1xf32>
    %292 = vector.broadcast %291 : vector<8x1xf32> to vector<8x8xf32>
    %293 = arith.subf %289, %292 : vector<8x8xf32>
    %294 = math.exp %293 : vector<8x8xf32>
    %cst_139 = arith.constant dense<0.000000e+00> : vector<8xf32>
    %295 = vector.multi_reduction <add>, %294, %cst_139 [1] : vector<8x8xf32> to vector<8xf32>
    %296 = vector.shape_cast %295 : vector<8xf32> to vector<8x1xf32>
    %297 = tpu.reciprocal %296 {approx = true} : vector<8x1xf32> -> vector<8x1xf32>
    %298 = vector.broadcast %297 : vector<8x1xf32> to vector<8x8xf32>
    %299 = arith.mulf %294, %298 : vector<8x8xf32>
    %cst_140 = arith.constant dense<0.000000e+00> : vector<8x8xf32>
    %300 = tpu.matmul %299, %283, %cst_140 {dimension_numbers = #tpu.dot_dimension_numbers<[1], [0], [0], [1], [0, 0, 1, 1], [], []>} : vector<8x8xf32>, vector<8x8xf32>, vector<8x8xf32> -> vector<8x8xf32>
    %301 = vector.extract_strided_slice %258 {offsets = [8, 0], sizes = [8, 32], strides = [1, 1]} : vector<32x32xf32> to vector<8x32xf32>
    %cst_141 = arith.constant dense<0.000000e+00> : vector<8x32xf32>
    %302 = tpu.matmul %300, %301, %cst_141 {dimension_numbers = #tpu.dot_dimension_numbers<[1], [0], [0], [1], [0, 0, 1, 1], [], []>} : vector<8x8xf32>, vector<8x32xf32>, vector<8x32xf32> -> vector<8x32xf32>
    %303 = arith.addf %280, %302 : vector<8x32xf32>
    %304 = vector.extract_strided_slice %256 {offsets = [0, 16], sizes = [8, 8], strides = [1, 1]} : vector<8x96xf32> to vector<8x8xf32>
    %305 = vector.extract_strided_slice %256 {offsets = [0, 48], sizes = [8, 8], strides = [1, 1]} : vector<8x96xf32> to vector<8x8xf32>
    %306 = vector.extract_strided_slice %256 {offsets = [0, 80], sizes = [8, 8], strides = [1, 1]} : vector<8x96xf32> to vector<8x8xf32>
    %307 = tpu.transpose %305, [1, 0] : vector<8x8xf32> -> vector<8x8xf32>
    %cst_142 = arith.constant dense<0.000000e+00> : vector<8x8xf32>
    %308 = tpu.matmul %304, %307, %cst_142 {dimension_numbers = #tpu.dot_dimension_numbers<[1], [0], [0], [1], [0, 0, 1, 1], [], []>} : vector<8x8xf32>, vector<8x8xf32>, vector<8x8xf32> -> vector<8x8xf32>
    %cst_143 = arith.constant 0.353553385 : f32
    %309 = vector.broadcast %cst_143 : f32 to vector<8x8xf32>
    %310 = arith.mulf %308, %309 : vector<8x8xf32>
    %311 = vector.broadcast %79 : vector<1x8xf32> to vector<8x8xf32>
    %312 = arith.addf %310, %311 : vector<8x8xf32>
    %cst_144 = arith.constant dense<0xFF800000> : vector<8xf32>
    %313 = vector.multi_reduction <maximumf>, %312, %cst_144 [1] : vector<8x8xf32> to vector<8xf32>
    %314 = vector.shape_cast %313 : vector<8xf32> to vector<8x1xf32>
    %315 = vector.broadcast %314 : vector<8x1xf32> to vector<8x8xf32>
    %316 = arith.subf %312, %315 : vector<8x8xf32>
    %317 = math.exp %316 : vector<8x8xf32>
    %cst_145 = arith.constant dense<0.000000e+00> : vector<8xf32>
    %318 = vector.multi_reduction <add>, %317, %cst_145 [1] : vector<8x8xf32> to vector<8xf32>
    %319 = vector.shape_cast %318 : vector<8xf32> to vector<8x1xf32>
    %320 = tpu.reciprocal %319 {approx = true} : vector<8x1xf32> -> vector<8x1xf32>
    %321 = vector.broadcast %320 : vector<8x1xf32> to vector<8x8xf32>
    %322 = arith.mulf %317, %321 : vector<8x8xf32>
    %cst_146 = arith.constant dense<0.000000e+00> : vector<8x8xf32>
    %323 = tpu.matmul %322, %306, %cst_146 {dimension_numbers = #tpu.dot_dimension_numbers<[1], [0], [0], [1], [0, 0, 1, 1], [], []>} : vector<8x8xf32>, vector<8x8xf32>, vector<8x8xf32> -> vector<8x8xf32>
    %324 = vector.extract_strided_slice %258 {offsets = [16, 0], sizes = [8, 32], strides = [1, 1]} : vector<32x32xf32> to vector<8x32xf32>
    %cst_147 = arith.constant dense<0.000000e+00> : vector<8x32xf32>
    %325 = tpu.matmul %323, %324, %cst_147 {dimension_numbers = #tpu.dot_dimension_numbers<[1], [0], [0], [1], [0, 0, 1, 1], [], []>} : vector<8x8xf32>, vector<8x32xf32>, vector<8x32xf32> -> vector<8x32xf32>
    %326 = arith.addf %303, %325 : vector<8x32xf32>
    %327 = vector.extract_strided_slice %256 {offsets = [0, 24], sizes = [8, 8], strides = [1, 1]} : vector<8x96xf32> to vector<8x8xf32>
    %328 = vector.extract_strided_slice %256 {offsets = [0, 56], sizes = [8, 8], strides = [1, 1]} : vector<8x96xf32> to vector<8x8xf32>
    %329 = vector.extract_strided_slice %256 {offsets = [0, 88], sizes = [8, 8], strides = [1, 1]} : vector<8x96xf32> to vector<8x8xf32>
    %330 = tpu.transpose %328, [1, 0] : vector<8x8xf32> -> vector<8x8xf32>
    %cst_148 = arith.constant dense<0.000000e+00> : vector<8x8xf32>
    %331 = tpu.matmul %327, %330, %cst_148 {dimension_numbers = #tpu.dot_dimension_numbers<[1], [0], [0], [1], [0, 0, 1, 1], [], []>} : vector<8x8xf32>, vector<8x8xf32>, vector<8x8xf32> -> vector<8x8xf32>
    %cst_149 = arith.constant 0.353553385 : f32
    %332 = vector.broadcast %cst_149 : f32 to vector<8x8xf32>
    %333 = arith.mulf %331, %332 : vector<8x8xf32>
    %334 = vector.broadcast %79 : vector<1x8xf32> to vector<8x8xf32>
    %335 = arith.addf %333, %334 : vector<8x8xf32>
    %cst_150 = arith.constant dense<0xFF800000> : vector<8xf32>
    %336 = vector.multi_reduction <maximumf>, %335, %cst_150 [1] : vector<8x8xf32> to vector<8xf32>
    %337 = vector.shape_cast %336 : vector<8xf32> to vector<8x1xf32>
    %338 = vector.broadcast %337 : vector<8x1xf32> to vector<8x8xf32>
    %339 = arith.subf %335, %338 : vector<8x8xf32>
    %340 = math.exp %339 : vector<8x8xf32>
    %cst_151 = arith.constant dense<0.000000e+00> : vector<8xf32>
    %341 = vector.multi_reduction <add>, %340, %cst_151 [1] : vector<8x8xf32> to vector<8xf32>
    %342 = vector.shape_cast %341 : vector<8xf32> to vector<8x1xf32>
    %343 = tpu.reciprocal %342 {approx = true} : vector<8x1xf32> -> vector<8x1xf32>
    %344 = vector.broadcast %343 : vector<8x1xf32> to vector<8x8xf32>
    %345 = arith.mulf %340, %344 : vector<8x8xf32>
    %cst_152 = arith.constant dense<0.000000e+00> : vector<8x8xf32>
    %346 = tpu.matmul %345, %329, %cst_152 {dimension_numbers = #tpu.dot_dimension_numbers<[1], [0], [0], [1], [0, 0, 1, 1], [], []>} : vector<8x8xf32>, vector<8x8xf32>, vector<8x8xf32> -> vector<8x8xf32>
    %347 = vector.extract_strided_slice %258 {offsets = [24, 0], sizes = [8, 32], strides = [1, 1]} : vector<32x32xf32> to vector<8x32xf32>
    %cst_153 = arith.constant dense<0.000000e+00> : vector<8x32xf32>
    %348 = tpu.matmul %346, %347, %cst_153 {dimension_numbers = #tpu.dot_dimension_numbers<[1], [0], [0], [1], [0, 0, 1, 1], [], []>} : vector<8x8xf32>, vector<8x32xf32>, vector<8x32xf32> -> vector<8x32xf32>
    %349 = arith.addf %326, %348 : vector<8x32xf32>
    %c1_154 = arith.constant 1 : index
    %c0_155 = arith.constant 0 : index
    %c0_156 = arith.constant 0 : index
    %350 = vector.load %arg24[%c1_154, %c0_155, %c0_156] : memref<2x1x32xf32, #tpu.memory_space<vmem>>, vector<1x1x32xf32>
    %351 = vector.shape_cast %350 : vector<1x1x32xf32> to vector<1x32xf32>
    %352 = vector.broadcast %351 : vector<1x32xf32> to vector<8x32xf32>
    %353 = arith.addf %349, %352 : vector<8x32xf32>
    %354 = arith.addf %249, %353 : vector<8x32xf32>
    %c1_157 = arith.constant 1 : index
    %c0_158 = arith.constant 0 : index
    %c0_159 = arith.constant 0 : index
    %355 = vector.load %arg29[%c1_157, %c0_158, %c0_159] : memref<2x1x32xf32, #tpu.memory_space<vmem>>, vector<1x1x32xf32>
    %356 = vector.shape_cast %355 : vector<1x1x32xf32> to vector<1x32xf32>
    %c1_160 = arith.constant 1 : index
    %c0_161 = arith.constant 0 : index
    %c0_162 = arith.constant 0 : index
    %357 = vector.load %arg30[%c1_160, %c0_161, %c0_162] : memref<2x1x32xf32, #tpu.memory_space<vmem>>, vector<1x1x32xf32>
    %358 = vector.shape_cast %357 : vector<1x1x32xf32> to vector<1x32xf32>
    %cst_163 = arith.constant dense<0.000000e+00> : vector<8xf32>
    %359 = vector.multi_reduction <add>, %354, %cst_163 [1] : vector<8x32xf32> to vector<8xf32>
    %360 = vector.shape_cast %359 : vector<8xf32> to vector<8x1xf32>
    %cst_164 = arith.constant 3.200000e+01 : f32
    %361 = vector.broadcast %cst_164 : f32 to vector<8x1xf32>
    %362 = arith.divf %360, %361 : vector<8x1xf32>
    %363 = vector.broadcast %362 : vector<8x1xf32> to vector<8x32xf32>
    %364 = arith.subf %354, %363 : vector<8x32xf32>
    %365 = arith.mulf %364, %364 : vector<8x32xf32>
    %cst_165 = arith.constant dense<0.000000e+00> : vector<8xf32>
    %366 = vector.multi_reduction <add>, %365, %cst_165 [1] : vector<8x32xf32> to vector<8xf32>
    %367 = vector.shape_cast %366 : vector<8xf32> to vector<8x1xf32>
    %cst_166 = arith.constant 3.200000e+01 : f32
    %368 = vector.broadcast %cst_166 : f32 to vector<8x1xf32>
    %369 = arith.divf %367, %368 : vector<8x1xf32>
    %cst_167 = arith.constant 9.99999974E-6 : f32
    %370 = vector.broadcast %cst_167 : f32 to vector<8x1xf32>
    %371 = arith.addf %369, %370 : vector<8x1xf32>
    %372 = math.rsqrt %371 : vector<8x1xf32>
    %373 = vector.broadcast %372 : vector<8x1xf32> to vector<8x32xf32>
    %374 = arith.mulf %364, %373 : vector<8x32xf32>
    %375 = vector.broadcast %356 : vector<1x32xf32> to vector<8x32xf32>
    %376 = arith.mulf %374, %375 : vector<8x32xf32>
    %377 = vector.broadcast %358 : vector<1x32xf32> to vector<8x32xf32>
    %378 = arith.addf %376, %377 : vector<8x32xf32>
    %c1_168 = arith.constant 1 : index
    %c0_169 = arith.constant 0 : index
    %c0_170 = arith.constant 0 : index
    %379 = vector.load %arg25[%c1_168, %c0_169, %c0_170] : memref<2x32x64xf32, #tpu.memory_space<vmem>>, vector<1x32x64xf32>
    %380 = vector.shape_cast %379 : vector<1x32x64xf32> to vector<32x64xf32>
    %cst_171 = arith.constant dense<0.000000e+00> : vector<8x64xf32>
    %381 = tpu.matmul %378, %380, %cst_171 {dimension_numbers = #tpu.dot_dimension_numbers<[1], [0], [0], [1], [0, 0, 1, 1], [], []>} : vector<8x32xf32>, vector<32x64xf32>, vector<8x64xf32> -> vector<8x64xf32>
    %c1_172 = arith.constant 1 : index
    %c0_173 = arith.constant 0 : index
    %c0_174 = arith.constant 0 : index
    %382 = vector.load %arg26[%c1_172, %c0_173, %c0_174] : memref<2x1x64xf32, #tpu.memory_space<vmem>>, vector<1x1x64xf32>
    %383 = vector.shape_cast %382 : vector<1x1x64xf32> to vector<1x64xf32>
    %384 = vector.broadcast %383 : vector<1x64xf32> to vector<8x64xf32>
    %385 = arith.addf %381, %384 : vector<8x64xf32>
    %cst_175 = arith.constant 0.000000e+00 : f32
    %386 = vector.broadcast %cst_175 : f32 to vector<8x64xf32>
    %387 = arith.maximumf %385, %386 : vector<8x64xf32>
    %c1_176 = arith.constant 1 : index
    %c0_177 = arith.constant 0 : index
    %c0_178 = arith.constant 0 : index
    %388 = vector.load %arg27[%c1_176, %c0_177, %c0_178] : memref<2x64x32xf32, #tpu.memory_space<vmem>>, vector<1x64x32xf32>
    %389 = vector.shape_cast %388 : vector<1x64x32xf32> to vector<64x32xf32>
    %cst_179 = arith.constant dense<0.000000e+00> : vector<8x32xf32>
    %390 = tpu.matmul %387, %389, %cst_179 {dimension_numbers = #tpu.dot_dimension_numbers<[1], [0], [0], [1], [0, 0, 1, 1], [], []>} : vector<8x64xf32>, vector<64x32xf32>, vector<8x32xf32> -> vector<8x32xf32>
    %c1_180 = arith.constant 1 : index
    %c0_181 = arith.constant 0 : index
    %c0_182 = arith.constant 0 : index
    %391 = vector.load %arg28[%c1_180, %c0_181, %c0_182] : memref<2x1x32xf32, #tpu.memory_space<vmem>>, vector<1x1x32xf32>
    %392 = vector.shape_cast %391 : vector<1x1x32xf32> to vector<1x32xf32>
    %393 = vector.broadcast %392 : vector<1x32xf32> to vector<8x32xf32>
    %394 = arith.addf %390, %393 : vector<8x32xf32>
    %395 = arith.addf %378, %394 : vector<8x32xf32>
    %c1_183 = arith.constant 1 : index
    %c0_184 = arith.constant 0 : index
    %c0_185 = arith.constant 0 : index
    %396 = vector.load %arg31[%c1_183, %c0_184, %c0_185] : memref<2x1x32xf32, #tpu.memory_space<vmem>>, vector<1x1x32xf32>
    %397 = vector.shape_cast %396 : vector<1x1x32xf32> to vector<1x32xf32>
    %c1_186 = arith.constant 1 : index
    %c0_187 = arith.constant 0 : index
    %c0_188 = arith.constant 0 : index
    %398 = vector.load %arg32[%c1_186, %c0_187, %c0_188] : memref<2x1x32xf32, #tpu.memory_space<vmem>>, vector<1x1x32xf32>
    %399 = vector.shape_cast %398 : vector<1x1x32xf32> to vector<1x32xf32>
    %cst_189 = arith.constant dense<0.000000e+00> : vector<8xf32>
    %400 = vector.multi_reduction <add>, %395, %cst_189 [1] : vector<8x32xf32> to vector<8xf32>
    %401 = vector.shape_cast %400 : vector<8xf32> to vector<8x1xf32>
    %cst_190 = arith.constant 3.200000e+01 : f32
    %402 = vector.broadcast %cst_190 : f32 to vector<8x1xf32>
    %403 = arith.divf %401, %402 : vector<8x1xf32>
    %404 = vector.broadcast %403 : vector<8x1xf32> to vector<8x32xf32>
    %405 = arith.subf %395, %404 : vector<8x32xf32>
    %406 = arith.mulf %405, %405 : vector<8x32xf32>
    %cst_191 = arith.constant dense<0.000000e+00> : vector<8xf32>
    %407 = vector.multi_reduction <add>, %406, %cst_191 [1] : vector<8x32xf32> to vector<8xf32>
    %408 = vector.shape_cast %407 : vector<8xf32> to vector<8x1xf32>
    %cst_192 = arith.constant 3.200000e+01 : f32
    %409 = vector.broadcast %cst_192 : f32 to vector<8x1xf32>
    %410 = arith.divf %408, %409 : vector<8x1xf32>
    %cst_193 = arith.constant 9.99999974E-6 : f32
    %411 = vector.broadcast %cst_193 : f32 to vector<8x1xf32>
    %412 = arith.addf %410, %411 : vector<8x1xf32>
    %413 = math.rsqrt %412 : vector<8x1xf32>
    %414 = vector.broadcast %413 : vector<8x1xf32> to vector<8x32xf32>
    %415 = arith.mulf %405, %414 : vector<8x32xf32>
    %416 = vector.broadcast %397 : vector<1x32xf32> to vector<8x32xf32>
    %417 = arith.mulf %415, %416 : vector<8x32xf32>
    %418 = vector.broadcast %399 : vector<1x32xf32> to vector<8x32xf32>
    %419 = arith.addf %417, %418 : vector<8x32xf32>
    %420 = arith.mulf %419, %419 : vector<8x32xf32>
    %cst_194 = arith.constant dense<0.000000e+00> : vector<32xf32>
    %421 = vector.multi_reduction <add>, %420, %cst_194 [0] : vector<8x32xf32> to vector<32xf32>
    %422 = vector.shape_cast %421 : vector<32xf32> to vector<1x32xf32>
    %cst_195 = arith.constant 1.000000e-24 : f32
    %423 = vector.broadcast %cst_195 : f32 to vector<1x32xf32>
    %424 = arith.maximumf %422, %423 : vector<1x32xf32>
    %425 = math.rsqrt %424 : vector<1x32xf32>
    %426 = vector.broadcast %425 : vector<1x32xf32> to vector<8x32xf32>
    %427 = arith.mulf %419, %426 : vector<8x32xf32>
    %c0_196 = arith.constant 0 : index
    %c0_197 = arith.constant 0 : index
    %428 = vector.load %arg17[%c0_196, %c0_197] : memref<32x32xf32, #tpu.memory_space<vmem>>, vector<32x32xf32>
    %cst_198 = arith.constant dense<0.000000e+00> : vector<8x32xf32>
    %429 = tpu.matmul %427, %428, %cst_198 {dimension_numbers = #tpu.dot_dimension_numbers<[1], [0], [0], [1], [0, 0, 1, 1], [], []>} : vector<8x32xf32>, vector<32x32xf32>, vector<8x32xf32> -> vector<8x32xf32>
    %c0_199 = arith.constant 0 : index
    %c0_200 = arith.constant 0 : index
    %430 = vector.load %arg18[%c0_199, %c0_200] : memref<1x32xf32, #tpu.memory_space<vmem>>, vector<1x32xf32>
    %431 = vector.broadcast %430 : vector<1x32xf32> to vector<8x32xf32>
    %432 = arith.addf %429, %431 : vector<8x32xf32>
    %433 = math.tanh %432 : vector<8x32xf32>
    %c0_201 = arith.constant 0 : index
    %c0_202 = arith.constant 0 : index
    %434 = vector.load %arg19[%c0_201, %c0_202] : memref<32x16xf32, #tpu.memory_space<vmem>>, vector<32x16xf32>
    %cst_203 = arith.constant dense<0.000000e+00> : vector<8x16xf32>
    %435 = tpu.matmul %433, %434, %cst_203 {dimension_numbers = #tpu.dot_dimension_numbers<[1], [0], [0], [1], [0, 0, 1, 1], [], []>} : vector<8x32xf32>, vector<32x16xf32>, vector<8x16xf32> -> vector<8x16xf32>
    %c0_204 = arith.constant 0 : index
    %c0_205 = arith.constant 0 : index
    %436 = vector.load %arg20[%c0_204, %c0_205] : memref<1x16xf32, #tpu.memory_space<vmem>>, vector<1x16xf32>
    %437 = vector.broadcast %436 : vector<1x16xf32> to vector<8x16xf32>
    %438 = arith.addf %435, %437 : vector<8x16xf32>
    %439 = arith.mulf %438, %438 : vector<8x16xf32>
    %cst_206 = arith.constant dense<0.000000e+00> : vector<16xf32>
    %440 = vector.multi_reduction <add>, %439, %cst_206 [0] : vector<8x16xf32> to vector<16xf32>
    %441 = vector.shape_cast %440 : vector<16xf32> to vector<1x16xf32>
    %cst_207 = arith.constant 1.000000e-24 : f32
    %442 = vector.broadcast %cst_207 : f32 to vector<1x16xf32>
    %443 = arith.maximumf %441, %442 : vector<1x16xf32>
    %444 = math.rsqrt %443 : vector<1x16xf32>
    %445 = vector.broadcast %444 : vector<1x16xf32> to vector<8x16xf32>
    %446 = arith.mulf %438, %445 : vector<8x16xf32>
    %c0_208 = arith.constant 0 : index
    %c0_209 = arith.constant 0 : index
    %c0_210 = arith.constant 0 : index
    %447 = vector.load %arg33[%c0_208, %c0_209, %c0_210] : memref<1x8x16xf32, #tpu.memory_space<vmem>>, vector<1x8x16xf32>
    %448 = vector.shape_cast %447 : vector<1x8x16xf32> to vector<8x16xf32>
    %449 = vector.shape_cast %446 : vector<8x16xf32> to vector<1x8x16xf32>
    tpu.vector_store %arg33[%c0_208, %c0_209, %c0_210], %449 {strides = array<i32>} : memref<1x8x16xf32, #tpu.memory_space<vmem>>, vector<1x8x16xf32>,
    return
  }
  func.func @transform_0(%arg0: i32) -> (i32, i32, i32) {
    %c0_i32 = arith.constant 0 : i32
    %c0_i32_0 = arith.constant 0 : i32
    %c0_i32_1 = arith.constant 0 : i32
    return %arg0, %c0_i32, %c0_i32_0 : i32, i32, i32
  }
  func.func @transform_1(%arg0: i32) -> (i32, i32) {
    %c0_i32 = arith.constant 0 : i32
    %c0_i32_0 = arith.constant 0 : i32
    %c0_i32_1 = arith.constant 0 : i32
    return %c0_i32, %c0_i32_0 : i32, i32
  }
  func.func @transform_2(%arg0: i32) -> (i32, i32, i32) {
    %c0_i32 = arith.constant 0 : i32
    %c0_i32_0 = arith.constant 0 : i32
    %c0_i32_1 = arith.constant 0 : i32
    return %arg0, %c0_i32, %c0_i32_0 : i32, i32, i32
  }
  func.func @transform_3(%arg0: i32) -> (i32, i32, i32) {
    %c0_i32 = arith.constant 0 : i32
    %c0_i32_0 = arith.constant 0 : i32
    %c0_i32_1 = arith.constant 0 : i32
    return %arg0, %c0_i32, %c0_i32_0 : i32, i32, i32
  }
  func.func @transform_4(%arg0: i32) -> (i32, i32) {
    %c0_i32 = arith.constant 0 : i32
    %c0_i32_0 = arith.constant 0 : i32
    %c0_i32_1 = arith.constant 0 : i32
    return %c0_i32, %c0_i32_0 : i32, i32
  }
  func.func @transform_5(%arg0: i32) -> (i32, i32) {
    %c0_i32 = arith.constant 0 : i32
    %c0_i32_0 = arith.constant 0 : i32
    %c0_i32_1 = arith.constant 0 : i32
    return %c0_i32, %c0_i32_0 : i32, i32
  }
  func.func @transform_6(%arg0: i32) -> (i32, i32) {
    %c0_i32 = arith.constant 0 : i32
    %c0_i32_0 = arith.constant 0 : i32
    %c0_i32_1 = arith.constant 0 : i32
    return %c0_i32, %c0_i32_0 : i32, i32
  }
  func.func @transform_7(%arg0: i32) -> (i32, i32) {
    %c0_i32 = arith.constant 0 : i32
    %c0_i32_0 = arith.constant 0 : i32
    %c0_i32_1 = arith.constant 0 : i32
    return %c0_i32, %c0_i32_0 : i32, i32
  }
  func.func @transform_8(%arg0: i32) -> (i32, i32) {
    %c0_i32 = arith.constant 0 : i32
    %c0_i32_0 = arith.constant 0 : i32
    %c0_i32_1 = arith.constant 0 : i32
    return %c0_i32, %c0_i32_0 : i32, i32
  }
  func.func @transform_9(%arg0: i32) -> (i32, i32) {
    %c0_i32 = arith.constant 0 : i32
    %c0_i32_0 = arith.constant 0 : i32
    %c0_i32_1 = arith.constant 0 : i32
    return %c0_i32, %c0_i32_0 : i32, i32
  }
  func.func @transform_10(%arg0: i32) -> (i32, i32) {
    %c0_i32 = arith.constant 0 : i32
    %c0_i32_0 = arith.constant 0 : i32
    %c0_i32_1 = arith.constant 0 : i32
    return %c0_i32, %c0_i32_0 : i32, i32
  }
  func.func @transform_11(%arg0: i32) -> (i32, i32) {
    %c0_i32 = arith.constant 0 : i32
    %c0_i32_0 = arith.constant 0 : i32
    %c0_i32_1 = arith.constant 0 : i32
    return %c0_i32, %c0_i32_0 : i32, i32
  }
  func.func @transform_12(%arg0: i32) -> (i32, i32) {
    %c0_i32 = arith.constant 0 : i32
    %c0_i32_0 = arith.constant 0 : i32
    %c0_i32_1 = arith.constant 0 : i32
    return %c0_i32, %c0_i32_0 : i32, i32
  }
  func.func @transform_13(%arg0: i32) -> (i32, i32) {
    %c0_i32 = arith.constant 0 : i32
    %c0_i32_0 = arith.constant 0 : i32
    %c0_i32_1 = arith.constant 0 : i32
    return %c0_i32, %c0_i32_0 : i32, i32
  }
  func.func @transform_14(%arg0: i32) -> (i32, i32) {
    %c0_i32 = arith.constant 0 : i32
    %c0_i32_0 = arith.constant 0 : i32
    %c0_i32_1 = arith.constant 0 : i32
    return %c0_i32, %c0_i32_0 : i32, i32
  }
  func.func @transform_15(%arg0: i32) -> (i32, i32) {
    %c0_i32 = arith.constant 0 : i32
    %c0_i32_0 = arith.constant 0 : i32
    %c0_i32_1 = arith.constant 0 : i32
    return %c0_i32, %c0_i32_0 : i32, i32
  }
  func.func @transform_16(%arg0: i32) -> (i32, i32) {
    %c0_i32 = arith.constant 0 : i32
    %c0_i32_0 = arith.constant 0 : i32
    %c0_i32_1 = arith.constant 0 : i32
    return %c0_i32, %c0_i32_0 : i32, i32
  }
  func.func @transform_17(%arg0: i32) -> (i32, i32) {
    %c0_i32 = arith.constant 0 : i32
    %c0_i32_0 = arith.constant 0 : i32
    %c0_i32_1 = arith.constant 0 : i32
    return %c0_i32, %c0_i32_0 : i32, i32
  }
  func.func @transform_18(%arg0: i32) -> (i32, i32) {
    %c0_i32 = arith.constant 0 : i32
    %c0_i32_0 = arith.constant 0 : i32
    %c0_i32_1 = arith.constant 0 : i32
    return %c0_i32, %c0_i32_0 : i32, i32
  }
  func.func @transform_19(%arg0: i32) -> (i32, i32) {
    %c0_i32 = arith.constant 0 : i32
    %c0_i32_0 = arith.constant 0 : i32
    %c0_i32_1 = arith.constant 0 : i32
    return %c0_i32, %c0_i32_0 : i32, i32
  }
  func.func @transform_20(%arg0: i32) -> (i32, i32, i32) {
    %c0_i32 = arith.constant 0 : i32
    %c0_i32_0 = arith.constant 0 : i32
    %c0_i32_1 = arith.constant 0 : i32
    %c0_i32_2 = arith.constant 0 : i32
    return %c0_i32, %c0_i32_0, %c0_i32_1 : i32, i32, i32
  }
  func.func @transform_21(%arg0: i32) -> (i32, i32, i32) {
    %c0_i32 = arith.constant 0 : i32
    %c0_i32_0 = arith.constant 0 : i32
    %c0_i32_1 = arith.constant 0 : i32
    %c0_i32_2 = arith.constant 0 : i32
    return %c0_i32, %c0_i32_0, %c0_i32_1 : i32, i32, i32
  }
  func.func @transform_22(%arg0: i32) -> (i32, i32, i32) {
    %c0_i32 = arith.constant 0 : i32
    %c0_i32_0 = arith.constant 0 : i32
    %c0_i32_1 = arith.constant 0 : i32
    %c0_i32_2 = arith.constant 0 : i32
    return %c0_i32, %c0_i32_0, %c0_i32_1 : i32, i32, i32
  }
  func.func @transform_23(%arg0: i32) -> (i32, i32, i32) {
    %c0_i32 = arith.constant 0 : i32
    %c0_i32_0 = arith.constant 0 : i32
    %c0_i32_1 = arith.constant 0 : i32
    %c0_i32_2 = arith.constant 0 : i32
    return %c0_i32, %c0_i32_0, %c0_i32_1 : i32, i32, i32
  }
  func.func @transform_24(%arg0: i32) -> (i32, i32, i32) {
    %c0_i32 = arith.constant 0 : i32
    %c0_i32_0 = arith.constant 0 : i32
    %c0_i32_1 = arith.constant 0 : i32
    %c0_i32_2 = arith.constant 0 : i32
    return %c0_i32, %c0_i32_0, %c0_i32_1 : i32, i32, i32
  }
  func.func @transform_25(%arg0: i32) -> (i32, i32, i32) {
    %c0_i32 = arith.constant 0 : i32
    %c0_i32_0 = arith.constant 0 : i32
    %c0_i32_1 = arith.constant 0 : i32
    %c0_i32_2 = arith.constant 0 : i32
    return %c0_i32, %c0_i32_0, %c0_i32_1 : i32, i32, i32
  }
  func.func @transform_26(%arg0: i32) -> (i32, i32, i32) {
    %c0_i32 = arith.constant 0 : i32
    %c0_i32_0 = arith.constant 0 : i32
    %c0_i32_1 = arith.constant 0 : i32
    %c0_i32_2 = arith.constant 0 : i32
    return %c0_i32, %c0_i32_0, %c0_i32_1 : i32, i32, i32
  }
  func.func @transform_27(%arg0: i32) -> (i32, i32, i32) {
    %c0_i32 = arith.constant 0 : i32
    %c0_i32_0 = arith.constant 0 : i32
    %c0_i32_1 = arith.constant 0 : i32
    %c0_i32_2 = arith.constant 0 : i32
    return %c0_i32, %c0_i32_0, %c0_i32_1 : i32, i32, i32
  }
  func.func @transform_28(%arg0: i32) -> (i32, i32, i32) {
    %c0_i32 = arith.constant 0 : i32
    %c0_i32_0 = arith.constant 0 : i32
    %c0_i32_1 = arith.constant 0 : i32
    %c0_i32_2 = arith.constant 0 : i32
    return %c0_i32, %c0_i32_0, %c0_i32_1 : i32, i32, i32
  }
  func.func @transform_29(%arg0: i32) -> (i32, i32, i32) {
    %c0_i32 = arith.constant 0 : i32
    %c0_i32_0 = arith.constant 0 : i32
    %c0_i32_1 = arith.constant 0 : i32
    %c0_i32_2 = arith.constant 0 : i32
    return %c0_i32, %c0_i32_0, %c0_i32_1 : i32, i32, i32
  }
  func.func @transform_30(%arg0: i32) -> (i32, i32, i32) {
    %c0_i32 = arith.constant 0 : i32
    %c0_i32_0 = arith.constant 0 : i32
    %c0_i32_1 = arith.constant 0 : i32
    %c0_i32_2 = arith.constant 0 : i32
    return %c0_i32, %c0_i32_0, %c0_i32_1 : i32, i32, i32
  }
  func.func @transform_31(%arg0: i32) -> (i32, i32, i32) {
    %c0_i32 = arith.constant 0 : i32
    %c0_i32_0 = arith.constant 0 : i32
    %c0_i32_1 = arith.constant 0 : i32
    %c0_i32_2 = arith.constant 0 : i32
    return %c0_i32, %c0_i32_0, %c0_i32_1 : i32, i32, i32
  }
  func.func @transform_32(%arg0: i32) -> (i32, i32, i32) {
    %c0_i32 = arith.constant 0 : i32
    %c0_i32_0 = arith.constant 0 : i32
    %c0_i32_1 = arith.constant 0 : i32
    return %arg0, %c0_i32, %c0_i32_0 : i32, i32, i32
  }
}

</mosaic_0001>

<bundles_post_ra>
// kernel: simp_transformer_forward.1
= control target key start
LH: loop header
LB: loop body
LE: loop exit
PB: predicated region body
PF: predicated region fallthrough
CT: control target
= control target key end

     0   :  { %s2953_s6 = smov 1   ;;  %s2954_s10 = smov 2   ;;  %s3514_s0 = inlined_call_operand.smem [shape: u32[33], index: -1, kind: input, shape index: {}] }
   0x1   :  { %s3005_s5 = sld [smem:[%s3514_s0]]   ;;  %s2955_s14 = smov 3  }
   0x2   :  { %s3010_s9 = sld [smem:[%s3514_s0 + %s2953_s6]]   ;;  %s2956_s18 = smov 4  }
   0x3   :  { %s3015_s13 = sld [smem:[%s3514_s0 + %s2954_s10]]   ;;  %s2957_s22 = smov 5  }
   0x4   :  { %s3020_s17 = sld [smem:[%s3514_s0 + %s2955_s14]]   ;;  %s2958_s26 = smov 6  }
   0x5   :  { %s3025_s21 = sld [smem:[%s3514_s0 + %s2956_s18]]   ;;  %s2959_s30 = smov 7  }
   0x6   :  { %s3030_s25 = sld [smem:[%s3514_s0 + %s2957_s22]]   ;;  %s2960_s4 = smov 8  }
   0x7   :  { %3547 = sst [smem:[#allocation5_spill]] %s3005_s5  ;;  %s2961_s10 = smov 9  }
   0x8   :  { %3548 = sst [smem:[#allocation6_spill]] %s3010_s9  ;;  %s2962_s15 = smov 10  }
   0x9   :  { %3549 = sst [smem:[#allocation7_spill]] %s3015_s13  ;;  %s2963_s20 = smov 11  }
   0xa   :  { %s3035_s29 = sld [smem:[%s3514_s0 + %s2958_s26]]   ;;  %s2964_s26 = smov 12  }
   0xb   :  { %s3040_s3 = sld [smem:[%s3514_s0 + %s2959_s30]]   ;;  %s2965_s1 = smov 13  }
   0xc   :  { %s3045_s8 = sld [smem:[%s3514_s0 + %s2960_s4]]   ;;  %s2966_s7 = smov 14  }
   0xd   :  { %s3050_s14 = sld [smem:[%s3514_s0 + %s2961_s10]]   ;;  %s2968_s22 = smov 16  }
   0xe   :  { %s3055_s19 = sld [smem:[%s3514_s0 + %s2962_s15]]   ;;  %s2967_s15 = smov 15  }
   0xf   :  { %s3060_s24 = sld [smem:[%s3514_s0 + %s2963_s20]]   ;;  %s2969_s28 = smov 17  }
  0x10   :  { %s3065_s30 = sld [smem:[%s3514_s0 + %s2964_s26]]  }
  0x11   :  { %3550 = sst [smem:[#allocation8_spill]] %s3040_s3 }
  0x12   :  { %3551 = sst [smem:[#allocation9_spill]] %s3045_s8 }
  0x13   :  { %3552 = sst [smem:[#allocation10_spill]] %s3050_s14 }
  0x14   :  { %s3070_s6 = sld [smem:[%s3514_s0 + %s2965_s1]]  }
  0x15   :  { %s3075_s12 = sld [smem:[%s3514_s0 + %s2966_s7]]   ;;  %s2970_s7 = smov 18  }
  0x16   :  { %s3080_s20 = sld [smem:[%s3514_s0 + %s2967_s15]]   ;;  %s2971_s15 = smov 19  }
  0x17   :  { %s3085_s27 = sld [smem:[%s3514_s0 + %s2968_s22]]   ;;  %s2972_s22 = smov 20  }
  0x18   :  { %s3090_s4 = sld [smem:[%s3514_s0 + %s2969_s28]]   ;;  %s2973_s28 = smov 21  }
  0x19   :  { %s3095_s9 = sld [smem:[%s3514_s0 + %s2970_s7]]   ;;  %s2974_s7 = smov 22  }
  0x1a   :  { %3553 = sst [smem:[#allocation11_spill]] %s3070_s6 }
  0x1b   :  { %3554 = sst [smem:[#allocation12_spill]] %s3075_s12 }
  0x1c   :  { %3555 = sst [smem:[#allocation13_spill]] %s3080_s20 }
  0x1d   :  { %3556 = sst [smem:[#allocation14_spill]] %s3085_s27 }
  0x1e   :  { %3557 = sst [smem:[#allocation15_spill]] %s3090_s4 }
  0x1f   :  { %3558 = sst [smem:[#allocation16_spill]] %s3095_s9 }
  0x20   :  { %s3100_s20 = sld [smem:[%s3514_s0 + %s2971_s15]]   ;;  %s2975_s15 = smov 23  }
  0x21   :  { %s3105_s27 = sld [smem:[%s3514_s0 + %s2972_s22]]   ;;  %s2976_s22 = smov 24  }
  0x22   :  { %s3110_s4 = sld [smem:[%s3514_s0 + %s2973_s28]]   ;;  %s2977_s28 = smov 25  }
  0x23   :  { %s3115_s9 = sld [smem:[%s3514_s0 + %s2974_s7]]   ;;  %s2978_s7 = smov 26  }
  0x26   :  { %3559 = sst [smem:[#allocation17_spill]] %s3100_s20 }
  0x27   :  { %3560 = sst [smem:[#allocation18_spill]] %s3105_s27 }
  0x28   :  { %3561 = sst [smem:[#allocation19_spill]] %s3110_s4 }
  0x29   :  { %3562 = sst [smem:[#allocation20_spill]] %s3115_s9 }
  0x2a   :  { %s3120_s20 = sld [smem:[%s3514_s0 + %s2975_s15]]   ;;  %s2979_s15 = smov 27  }
  0x2b   :  { %s3125_s27 = sld [smem:[%s3514_s0 + %s2976_s22]]   ;;  %s2980_s22 = smov 28  }
  0x2c   :  { %s3130_s4 = sld [smem:[%s3514_s0 + %s2977_s28]]   ;;  %s2981_s28 = smov 29  }
  0x2d   :  { %s3135_s9 = sld [smem:[%s3514_s0 + %s2978_s7]]   ;;  %s2982_s7 = smov 30  }
  0x30   :  { %3563 = sst [smem:[#allocation21_spill]] %s3120_s20 }
  0x31   :  { %3564 = sst [smem:[#allocation22_spill]] %s3125_s27 }
  0x32   :  { %3565 = sst [smem:[#allocation23_spill]] %s3130_s4 }
  0x33   :  { %3566 = sst [smem:[#allocation24_spill]] %s3135_s9 }
  0x34   :  { %s3140_s20 = sld [smem:[%s3514_s0 + %s2979_s15]]   ;;  %s2983_s15 = smov 31  }
  0x35   :  { %s3145_s27 = sld [smem:[%s3514_s0 + %s2980_s22]]   ;;  %s2984_s22 = smov 32  }
  0x36   :  { %s3150_s4 = sld [smem:[%s3514_s0 + %s2981_s28]]  }
  0x37   :  { %s3155_s9 = sld [smem:[%s3514_s0 + %s2982_s7]]  }
  0x3a   :  { %3567 = sst [smem:[#allocation25_spill]] %s3140_s20 }
  0x3b   :  { %3568 = sst [smem:[#allocation26_spill]] %s3145_s27 }
  0x3c   :  { %3569 = sst [smem:[#allocation27_spill]] %s3150_s4 }
  0x3d   :  { %3570 = sst [smem:[#allocation28_spill]] %s3155_s9 }
  0x3e   :  { %s3160_s20 = sld [smem:[%s3514_s0 + %s2983_s15]]  }
  0x3f   :  { %s3165_s27 = sld [smem:[%s3514_s0 + %s2984_s22]]  }
  0x40   :  { %70 = vsyncpa [#allocation3], 0 }
  0x41   :  { %72 = vsyncpa [#allocation3 + $0x1], 0  ;;  %s3167_s28 = smov 0   ;;  %s3169_s1 = smov 0  }
  0x42   :  { %s3171_s2 = smov 0   ;;  %s3173_s7 = smov 0  }
  0x43 LB: > { %s3571_s9 = sld [smem:[#allocation28_spill]]  ;;  %s3188_s0 = sadd.s32 4294967295, %s2951_s7   ;;  %s2951_s7 = sphi %s3173_s7, %s3612_s7   ;;  %s2947_s2 = sphi %s3171_s2, %s3611_s2   ;;  %s2943_s1 = sphi %s3169_s1, %s3610_s1   ;;  %s2939_s28 = sphi %s3167_s28, %s3609_s28  }
  0x44   : > { %s3572_s4 = sld [smem:[#allocation27_spill]]  ;;  %s2631_s10 = sadd.s32 4294967294, %s2951_s7  }
  0x45   : > { %s3573_s12 = sld [smem:[#allocation12_spill]]  ;;  %s3192_s11 = sadd.s32 1, %s2951_s7  }
  0x46   : > { %s3574_s8 = sld [smem:[#allocation9_spill]]  ;;  %s772_s15 = sadd.s32 1, %s2947_s2 }
  0x47   : > { %s769_s16 = ssub.s32 %s2951_s7, %s3192_s11  ;;  %p782_p0 = scmp.ne.s32.totalorder %s2947_s2, %s2943_s1 }
  0x48   : > { %p770_p1 = scmp.eq.s32.totalorder %s769_s16, 0  ;;  %p783_p2 = scmp.eq.s32.totalorder %s3188_s0, 1 }
  0x49   : > { %p788_p3 = scmp.ne.s32.totalorder %s2943_s1, %s2939_s28  ;;  %p789_p4 = scmp.eq.s32.totalorder %s2631_s10, 1 }
  0x4a   : > { %s3203_s18 = scalar_select %p770_p1, %s2947_s2, %s772_s15  }
  0x4b   : > { %p3205_p5 = por %p783_p2, %p782_p0  ;;  %p3209_p6 = por %p789_p4, %p788_p3 }
  0x4c   : > { %p2634_p7 = scmp.ge.s32.totalorder %s2951_s7, 1  ;;  %p913_p8 = scmp.lt.s32.totalorder %s2951_s7, 3 }
  0x4e   : > { %p914_p9 = pnand %p2634_p7, %p913_p8 }
  0x4f   : > { %s3577_s5 = sld [smem:[#allocation5_spill]] (!%p914_p9)  ;;  %p1000_p10 = scmp.lt.s32.totalorder (!%p914_p9), %s3188_s0, 1 }
  0x50   : > { %917 = sbr.rel (%p914_p9) target bundleno = 5689 (0x1639), region = 148  ;;  %s3578_s13 = sld [smem:[#allocation7_spill]] (!%p914_p9) }
  0x51   : > { %s3579_s3 = sld [smem:[#allocation8_spill]] (!%p914_p9) }
  0x52   : > { %s3580_s14 = sld [smem:[#allocation10_spill]] (!%p914_p9) }
  0x53   : > { %s3581_s6 = sld [smem:[#allocation11_spill]] (!%p914_p9) }
  0x54   : > { %s3585_s15 = sld [smem:[#allocation19_spill]] (!%p914_p9) }
  0x55   : > { %v1016_v0 = vld [vmem:[%s3025_s21 + $0x18] sm:$0xff]  ;;  %v1015_v1 = vld [vmem:[%s3025_s21 + $0x10] sm:$0xff]  ;;  %v1014_v2 = vld [vmem:[%s3025_s21 + $0x8] sm:$0xff]  ;;  %vm1021_vm0 = vcmask 261120   ;;  %s3221_s26 = scalar_select %p1000_p10, %s3188_s0, 1  ;;  %vm1209_vm5 = vcmask 130048  }
  0x56   : > { %1036 = vmatpush.msra.mxu0 %v1016_v0  ;;  %v1013_v3 = vld [vmem:[%s3025_s21] sm:$0xff]  ;;  %v1079_v5 = vld [vmem:[%s3035_s29 + $0x78] sm:$0xff]  ;;  %v1078_v6 = vld [vmem:[%s3035_s29 + $0x70] sm:$0xff] }
  0x57   : > { %s1002_s10 = scalar_lea.vmem %s3577_s5, %s3221_s26  ;;  %1084 = vmatpush.msra.mxu1 %v1079_v5  ;;  %v1077_v7 = vld [vmem:[%s3035_s29 + $0x68] sm:$0xff]  ;;  %v1076_v8 = vld [vmem:[%s3035_s29 + $0x60] sm:$0xff]  ;;  %v1075_v9 = vld [vmem:[%s3035_s29 + $0x58] sm:$0xff]  ;;  %s2636_s16 = sshll.u32 %s3221_s26, 3 }
  0x58   : > { %1037 = vmatpush.msra.mxu0 %v1015_v1  ;;  %v2799_v4 = vld [vmem:[%s1002_s10] ss:$0 sm:$0xff]  ;;  %v1074_v10 = vld [vmem:[%s3035_s29 + $0x50] sm:$0xff]  ;;  %v1073_v11 = vld [vmem:[%s3035_s29 + $0x48] sm:$0xff]  ;;  %s1006_s10 = scalar_lea.vmem %s3578_s13, %s2636_s16  ;;  %s3582_s16 = sld [smem:[#allocation13_spill]] }
  0x59   : > { %1085 = vmatpush.msra.mxu1 %v1078_v6  ;;  %v1072_v12 = vld [vmem:[%s3035_s29 + $0x40] sm:$0xff]  ;;  %v1071_v13 = vld [vmem:[%s3035_s29 + $0x38] sm:$0xff]  ;;  %v1070_v14 = vld [vmem:[%s3035_s29 + $0x30] sm:$0xff]  ;;  %s3528_s5 = smov 88   ;;  %s3529_s13 = smov 72  }
  0x5a   : > { %1038 = vmatpush.msra.mxu0 %v1014_v2  ;;  %v1069_v15 = vld [vmem:[%s3035_s29 + $0x28] sm:$0xff]  ;;  %v1068_v16 = vld [vmem:[%s3035_s29 + $0x20] sm:$0xff]  ;;  %v1067_v17 = vld [vmem:[%s3035_s29 + $0x18] sm:$0xff] }
  0x5b   : > { %1086 = vmatpush.msra.mxu1 %v1077_v7  ;;  %v1066_v18 = vld [vmem:[%s3035_s29 + $0x10] sm:$0xff]  ;;  %v1065_v19 = vld [vmem:[%s3035_s29 + $0x8] sm:$0xff]  ;;  %v2801_v20 = vld [vmem:[%s3030_s25] ss:$0 sm:$0xff] }
  0x5c   : > { %1039 = vmatpush.msra.mxu0 %v1013_v3  ;;  %v1064_v21 = vld [vmem:[%s3035_s29] sm:$0xff]  ;;  %v1107_v24 = vld [vmem:[%s3574_s8 + $0x18] sm:$0xff]  ;;  %v1106_v25 = vld [vmem:[%s3574_s8 + $0x10] sm:$0xff] }
  0x5d   : > { %2637 = vmatmul.msk.f32.vlgmr.msra.gmra.mxu0 %vm1021_vm0, %v2799_v4  ;;  %1087 = vmatpush.msra.mxu1 %v1076_v8  ;;  %v1105_v40 = vld [vmem:[%s3574_s8 + $0x8] sm:$0xff]  ;;  %v1104_v41 = vld [vmem:[%s3574_s8] sm:$0xff]  ;;  %v1158_v48 = vld [vmem:[%s3055_s19 + $0x18] sm:$0xff]  ;;  %s3534_s8 = smov 80  }
  0x5e   : > { %1127 = vmatpush.msra.mxu2 %v1107_v24  ;;  %v1204_v42 = vld [vmem:[%s3065_s30 + $0x8] sm:$0xff]  ;;  %v1203_v43 = vld [vmem:[%s3065_s30] sm:$0xff]  ;;  %1178 = vmatpush.msra.mxu3 %v1158_v48  ;;  %v1157_v49 = vld [vmem:[%s3055_s19 + $0x10] sm:$0xff] }
  0x5f   : > { %1088 = vmatpush.msra.mxu1 %v1075_v9  ;;  %1227 = vmatpush.msrb.mxu0 %v1204_v42  ;;  %v1202_v44 = vld [vmem:[%s1006_s10] sm:$0xff]  ;;  %v1156_v51 = vld [vmem:[%s3055_s19 + $0x8] sm:$0xff]  ;;  %v1237_v57 = vld [vmem:[%s3573_s12 + $0x18] sm:$0xff]  ;;  %s3583_s10 = sld [smem:[#allocation18_spill]] }
  0x60   : > { %1128 = vmatpush.msra.mxu2 %v1106_v25  ;;  %v2802_v45 = vld [vmem:[%s3579_s3] ss:$0 sm:$0xff]  ;;  %1179 = vmatpush.msra.mxu3 %v1157_v49  ;;  %v1236_v58 = vld [vmem:[%s3573_s12 + $0x10] sm:$0xff]  ;;  %v1235_v61 = vld [vmem:[%s3573_s12 + $0x8] sm:$0xff]  ;;  %s3586_s3 = sld [smem:[#allocation20_spill]] }
  0x61   : > { %1089 = vmatpush.msra.mxu1 %v1074_v10  ;;  %1228 = vmatpush.msrb.mxu0 %v1203_v43  ;;  %v2803_v50 = vld [vmem:[%s3580_s14] ss:$0 sm:$0xff]  ;;  %s3596_s14 = smov 104  }
  0x62   : > { %1129 = vmatpush.msra.mxu2 %v1105_v40  ;;  %1180 = vmatpush.msra.mxu3 %v1156_v51  ;;  %v1155_v52 = vld [vmem:[%s3055_s19] sm:$0xff] }
  0x63   : > { %1090 = vmatpush.msra.mxu1 %v1073_v11  ;;  %v2804_v55 = vld [vmem:[%s3581_s6] ss:$0 sm:$0xff]  ;;  %s3538_s6 = smov 96  }
  0x64   : > { %1130 = vmatpush.msra.mxu2 %v1104_v41  ;;  %1181 = vmatpush.msra.mxu3 %v1155_v52  ;;  %v1234_v62 = vld [vmem:[%s3573_s12] sm:$0xff]  ;;  %s3536_s12 = smov 64  }
  0x65   : > { %1091 = vmatpush.msra.mxu1 %v1072_v12  ;;  %2642 = vmatmul.msk.f32.vlgmr.msrb.gmra.mxu0 %vm1209_vm5, %v1202_v44 }
  0x66   : > { %1257 = vmatpush.msrb.mxu2 %v1237_v57 }
  0x67   : > { %1092 = vmatpush.msra.mxu1 %v1071_v13  ;;  %v2805_v13 = vld [vmem:[%s3060_s24] ss:$0 sm:$0xff] }
  0x68   : > { %1258 = vmatpush.msrb.mxu2 %v1236_v58 }
  0x69   : > { %1093 = vmatpush.msra.mxu1 %v1070_v14 }
  0x6a   : > { %1259 = vmatpush.msrb.mxu2 %v1235_v61 }
  0x6b   : > { %1094 = vmatpush.msra.mxu1 %v1069_v15 }
  0x6c   : > { %1260 = vmatpush.msrb.mxu2 %v1234_v62 }
  0x6d   : > { %1095 = vmatpush.msra.mxu1 %v1068_v16 }
  0x6f   : > { %1096 = vmatpush.msra.mxu1 %v1067_v17 }
  0x71   : > { %1097 = vmatpush.msra.mxu1 %v1066_v18  ;;  %v2806_v18 = vld [vmem:[%s3582_s16] ss:$0 sm:$0xff]  ;;  %s3584_s16 = sld [smem:[#allocation6_spill]] }
  0x73   : > { %1098 = vmatpush.msra.mxu1 %v1065_v19 }
  0x75   : > { %1099 = vmatpush.msra.mxu1 %v1064_v21 }
  0xda   : > { %v1041_v22 = vpop.f32.mrf.mxu0 }
  0xdb   : > { %v1042_v23 = vadd.f32 %v2801_v20, %v1041_v22 }
  0xdd   : > { %v2638_v26 = vmul.f32 -1.442695, %v1042_v23 }
  0xdf   : > { %2825 = vpow2.f32 %v2638_v26 }
  0xe2   : > { %v1230_v56 = vpop.f32.mrf.mxu0 }
  0xe3   : > { %v1231_v60 = vadd.f32 %v2804_v55, %v1230_v56 }
  0xe5   : > { %v2826_v27 = vpop.eup %2825 }
  0xe6   : > { %v1047_v28 = vadd.f32 1.0, %v2826_v27 }
  0xe8   : > { %2827 = vrcp.f32 %v1047_v28  ;;  %v1059_v32 = vand.u32 2147483648, %v1047_v28  ;;  %v1057_v34 = vand.u32 2147483647, %v1047_v28  ;;  %vm1053_vm2 = vweird.f32 %v1047_v28 }
  0xea   : > { %v1060_v36 = vor.u32 1.1754944e-38, %v1059_v32  ;;  %vm1058_vm4 = vcmp.eq.f32.partialorder %v1057_v34, 8.507059e+37  ;;  %v1311_v32 = vld [vmem:[%s3583_s10 + $0x8] sm:$0xff] }
  0xee   : > { %v2828_v29 = vpop.eup %2827 }
  0xef   : > { %v1049_v30 = vmul.f32 %v2828_v29, %v1047_v28  ;;  %vm1054_vm1 = vweird.f32 %v2828_v29 }
  0xf0   : > { %vm1055_vm3 = vmor %vm1053_vm2, %vm1054_vm1 }
  0xf1   : > { %v1050_v31 = vsub.f32 1.0, %v1049_v30  ;;  %v1313_v30 = vld [vmem:[%s3583_s10 + $0x18] sm:$0xff] }
  0xf2   : > { %1333 = vmatpush.msrb.mxu3 %v1313_v30 }
  0xf3   : > { %v1051_v33 = vmul.f32 %v2828_v29, %v1050_v31  ;;  %v1312_v31 = vld [vmem:[%s3583_s10 + $0x10] sm:$0xff] }
  0xf4   : > { %1334 = vmatpush.msrb.mxu3 %v1312_v31 }
  0xf5   : > { %v1052_v35 = vadd.f32 %v2828_v29, %v1051_v33  ;;  %v1310_v33 = vld [vmem:[%s3583_s10] sm:$0xff] }
  0xf6   : > { %1335 = vmatpush.msrb.mxu3 %v1311_v32 }
  0xf7   : > { %v1056_v37 = vsel %vm1055_vm3, %v2828_v29, %v1052_v35 }
  0xf8   : > { %v1061_v38 = vsel %vm1058_vm4, %v1060_v36, %v1056_v37  ;;  %1336 = vmatpush.msrb.mxu3 %v1310_v33  ;;  %vm1348_vm4 = vcmask 64512  }
  0xf9   : > { %v1063_v39 = vmul.f32 %v1061_v38, %v1042_v23 }
  0xfb   : > { %1100 = vmatmul.f32.vlgmr.msra.gmra.mxu1 %v1063_v39 }
 0x178   : > { %v1101_v46 = vpop.f32.mrf.mxu1 }
 0x179   : > { %v1102_v47 = vadd.f32 %v2802_v45, %v1101_v46 }
 0x17b   : > { %2639 = vmatmul.msk.f32.vlgmr.msra.gmra.mxu2 %vm1021_vm0, %v1102_v47 }
 0x1fe   : > { %v1132_v53 = vpop.f32.mrf.mxu2 }
 0x1ff   : > { %v1133_v54 = vadd.f32 %v2803_v50, %v1132_v53 }
 0x201   : > { %v2640_v59 = vmul.f32 -1.442695, %v1133_v54 }
 0x203   : > { %2829 = vpow2.f32 %v2640_v59 }
 0x204   : > { %2831 = vtanh.f32 %v1231_v60 }
 0x209   : > { %v2830_v63 = vpop.eup %2829 }
 0x20a   : > { %v2832_v0 = vpop.eup %2831  ;;  %v1138_v1 = vadd.f32 1.0, %v2830_v63 }
 0x20b   : > { %2643 = vmatmul.msk.f32.vlgmr.msrb.gmra.mxu2 %vm1021_vm0, %v2832_v0 }
 0x20c   : > { %2833 = vrcp.f32 %v1138_v1  ;;  %v1150_v5 = vand.u32 2147483648, %v1138_v1  ;;  %v1148_v7 = vand.u32 2147483647, %v1138_v1  ;;  %vm1144_vm7 = vweird.f32 %v1138_v1 }
 0x20e   : > { %v1151_v9 = vor.u32 1.1754944e-38, %v1150_v5  ;;  %vm1149_vm9 = vcmp.eq.f32.partialorder %v1148_v7, 8.507059e+37 }
 0x212   : > { %v2834_v2 = vpop.eup %2833 }
 0x213   : > { %v1140_v3 = vmul.f32 %v2834_v2, %v1138_v1  ;;  %vm1145_vm6 = vweird.f32 %v2834_v2 }
 0x214   : > { %vm1146_vm8 = vmor %vm1144_vm7, %vm1145_vm6 }
 0x215   : > { %v1141_v4 = vsub.f32 1.0, %v1140_v3 }
 0x217   : > { %v1142_v6 = vmul.f32 %v2834_v2, %v1141_v4 }
 0x219   : > { %v1143_v8 = vadd.f32 %v2834_v2, %v1142_v6  ;;  %v1307_v6 = vld [vmem:[%s3584_s16] sm:$0xff]  ;;  %s3535_s16 = smov 120  }
 0x21b   : > { %v1147_v10 = vsel %vm1146_vm8, %v2834_v2, %v1143_v8 }
 0x21c   : > { %v1152_v11 = vsel %vm1149_vm9, %v1151_v9, %v1147_v10  ;;  %v2807_v9 = vld [vmem:[%s3585_s15] ss:$0 sm:$0xff] }
 0x21d   : > { %v1154_v12 = vmul.f32 %v1152_v11, %v1133_v54 }
 0x21f   : > { %2641 = vmatmul.msk.f32.vlgmr.msra.gmra.mxu3 %vm1021_vm0, %v1154_v12  ;;  %v1341_v12 = vld [vmem:[%s3586_s3] sm:$0xff] }
 0x28e   : > { %v1262_v19 = vpop.f32.mrf.mxu2 }
 0x28f   : > { %v1263_v20 = vadd.f32 %v2806_v18, %v1262_v19 }
 0x291   : > { %v1265_v21 = vmul.f32 %v1263_v20, %v1263_v20 }
 0x293   : > { %v1266_v22 = vsel %vm1021_vm0, %v1265_v21, 0.0 }
 0x294   : > { %v1267_v23 = vrot.slane %v1266_v22, 4 }
 0x296   : > { %v1268_v24 = vadd.f32 %v1267_v23, %v1266_v22 }
 0x298   : > { %v1269_v25 = vrot.slane %v1268_v24, 2 }
 0x29a   : > { %v1270_v26 = vadd.f32 %v1269_v25, %v1268_v24 }
 0x29c   : > { %v1271_v27 = vrot.slane %v1270_v26, 1 }
 0x29e   : > { %v1272_v28 = vadd.f32 %v1271_v27, %v1270_v26 }
 0x2a0   : > { %v1273_v29 = vmax.f32 %v1272_v28, 1e-24 }
 0x2a2   : > { %v1183_v14 = vpop.f32.mrf.mxu3  ;;  %2835 = vrsqrt.f32 %v1273_v29  ;;  %vm1280_vm10 = vweird.f32 %v1273_v29 }
 0x2a3   : > { %v1184_v15 = vadd.f32 %v2805_v13, %v1183_v14 }
 0x2a5   : > { %v1186_v16 = vmul.f32 %v1184_v15, %v1184_v15 }
 0x2a7   : > { %v1187_v17 = vsel %vm1021_vm0, %v1186_v16, 0.0 }
 0x2a8   : > { %1188 = vadd.xlane.f32.xlu0 %v1187_v17  ;;  %v2836_v34 = vpop.eup %2835 }
 0x2a9   : > { %v1275_v35 = vmul.f32 %v2836_v34, %v1273_v29  ;;  %vm1281_vm11 = vweird.f32 %v2836_v34 }
 0x2aa   : > { %vm1282_vm13 = vmor %vm1280_vm10, %vm1281_vm11  ;;  %vm1799_vm10 = vcmask 523264  }
 0x2ab   : > { %v1276_v38 = vmul.f32 %v2836_v34, %v1275_v35 }
 0x2ad   : > { %v1277_v39 = vmul.f32 0.5, %v1276_v38 }
 0x2af   : > { %v1278_v42 = vsub.f32 1.5, %v1277_v39 }
 0x2b1   : > { %v1279_v45 = vmul.f32 %v2836_v34, %v1278_v42 }
 0x2b3   : > { %v1283_v48 = vsel %vm1282_vm13, %v2836_v34, %v1279_v45 }
 0x2b4   : > { %v1284_v51 = vmul.f32 %v1283_v48, %v1263_v20  ;;  %v1342_v48 = vld [vmem:[%s3586_s3 + $0x8] sm:$0xff] }
 0x31b   : > { %v1189_v36 = vpop.xlane.xlu0 %1188 }
 0x31c   : > { %v1190_v37 = vmax.f32 %v1189_v36, 1e-24 }
 0x31e   : > { %2837 = vrsqrt.f32 %v1190_v37  ;;  %vm1197_vm14 = vweird.f32 %v1190_v37 }
 0x324   : > { %v2838_v40 = vpop.eup %2837 }
 0x325   : > { %v1192_v41 = vmul.f32 %v2838_v40, %v1190_v37  ;;  %vm1198_vm12 = vweird.f32 %v2838_v40 }
 0x326   : > { %vm1199_vm15 = vmor %vm1197_vm14, %vm1198_vm12 }
 0x327   : > { %v1193_v43 = vmul.f32 %v2838_v40, %v1192_v41 }
 0x329   : > { %v1194_v44 = vmul.f32 0.5, %v1193_v43 }
 0x32b   : > { %v1195_v46 = vsub.f32 1.5, %v1194_v44 }
 0x32d   : > { %v1196_v47 = vmul.f32 %v2838_v40, %v1195_v46 }
 0x32f   : > { %v1200_v49 = vsel %vm1199_vm15, %v2838_v40, %v1196_v47 }
 0x330   : > { %v1201_v50 = vmul.f32 %v1200_v49, %v1184_v15 }
 0x332   : > { %v1285_v52 = vperm.slane %v1201_v50, 0 }
 0x334   : > { %v1286_v53 = vadd.f32 %v1285_v52, %v1284_v51 }
 0x336   : > { %v1287_v54 = vmul.f32 %v1286_v53, %v1286_v53 }
 0x338   : > { %v1288_v55 = vsel %vm1021_vm0, %v1287_v54, 0.0 }
 0x339   : > { %v1289_v56 = vrot.slane %v1288_v55, 4 }
 0x33b   : > { %v1290_v57 = vadd.f32 %v1289_v56, %v1288_v55 }
 0x33d   : > { %v1291_v58 = vrot.slane %v1290_v57, 2 }
 0x33f   : > { %v1292_v59 = vadd.f32 %v1291_v58, %v1290_v57 }
 0x341   : > { %v1293_v60 = vrot.slane %v1292_v59, 1 }
 0x343   : > { %v1294_v61 = vadd.f32 %v1293_v60, %v1292_v59 }
 0x345   : > { %v1295_v62 = vmax.f32 %v1294_v61, 1e-24 }
 0x347   : > { %2839 = vrsqrt.f32 %v1295_v62  ;;  %vm1302_vm2 = vweird.f32 %v1295_v62 }
 0x34d   : > { %v2840_v63 = vpop.eup %2839 }
 0x34e   : > { %v1297_v0 = vmul.f32 %v2840_v63, %v1295_v62  ;;  %vm1303_vm1 = vweird.f32 %v2840_v63 }
 0x34f   : > { %vm1304_vm3 = vmor %vm1302_vm2, %vm1303_vm1 }
 0x350   : > { %v1298_v1 = vmul.f32 %v2840_v63, %v1297_v0 }
 0x352   : > { %v1299_v2 = vmul.f32 0.5, %v1298_v1 }
 0x354   : > { %v1300_v3 = vsub.f32 1.5, %v1299_v2 }
 0x356   : > { %v1301_v4 = vmul.f32 %v2840_v63, %v1300_v3 }
 0x358   : > { %v1305_v5 = vsel %vm1304_vm3, %v2840_v63, %v1301_v4 }
 0x359   : > { %v1306_v7 = vmul.f32 %v1305_v5, %v1286_v53 }
 0x35b   : > { %v3278_v8 = vadd.f32 %v1307_v6, %v1306_v7 }
 0x35d   : > { %2644 = vmatmul.msk.f32.vlgmr.msrb.gmra.mxu3 %vm1021_vm0, %v3278_v8 }
 0x3e0   : > { %v1338_v10 = vpop.f32.mrf.mxu3 }
 0x3e1   : > { %v3283_v11 = vadd.f32 %v2807_v9, %v1338_v10 }
 0x3e3   : > { %1417 = vrot.lane.b32.xlu1 %v3283_v11, %s3528_s5  ;;  %1346 = vrot.lane.b32.xlu0 %v3283_v11, %s3538_s6  ;;  %s3532_s5 = smov 112   ;;  %s3594_s6 = smov 88  }
 0x3eb   : > { %1415 = vrot.lane.b32.xlu1 %v3283_v11, %s3535_s16  ;;  %1530 = vrot.lane.b32.xlu0 %v3283_v11, %s3534_s8  ;;  %s3590_s8 = sld [smem:[#allocation24_spill]] }
 0x3ec   : > { %s3591_s16 = sld [smem:[#allocation26_spill]] }
 0x3f3   : > { %1389 = vrot.lane.b32.xlu1 %v3283_v11, %s3536_s12  ;;  %1621 = vrot.lane.b32.xlu0 %v3283_v11, %s3529_s13  ;;  %s3587_s13 = scalar_lea.vmem %s3020_s17, %s3221_s26  ;;  %s3537_s26 = smov 104  }
 0x3f4   : > { %v3309_v19 = vld [vmem:[%s3587_s13] ss:$0 sm:$0xff]  ;;  %s3530_s13 = smov 56   ;;  %s3592_s12 = sld [smem:[#allocation23_spill]] }
 0x3fb   : > { %1528 = vrot.lane.b32.xlu0 %v3283_v11, %s3532_s5  ;;  %s3588_s5 = sld [smem:[#allocation21_spill]] }
 0x455   : > { %v1418_v13 = vpop.permute.xlu1 %1417  ;;  %v1347_v14 = vpop.permute.xlu0 %1346 }
 0x456   : > { %2645 = vmatpush.xpose.msk.msra.mxu0 %vm1348_vm4, %v1347_v14  ;;  %2648 = vmatpush.xpose.msk.msra.mxu3 %vm1348_vm4, %v1418_v13 }
 0x459   : > { %2646 = vmatmul.msk.f32.vlgmr.msra.gmra.mxu0 %vm1348_vm4, %v3283_v11 }
 0x45a   : > { %1523 = vmatpush.msrb.mxu3 %v1341_v12 }
 0x45d   : > { %v1416_v15 = vpop.permute.xlu1 %1415  ;;  %v1531_v16 = vpop.permute.xlu0 %1530 }
 0x45e   : > { %2649 = vmatmul.msk.f32.vlgmr.msra.gmra.mxu3 %vm1348_vm4, %v1416_v15  ;;  %v1344_v15 = vld [vmem:[%s3586_s3 + $0x18] sm:$0xff] }
 0x465   : > { %v1390_v17 = vpop.permute.xlu1 %1389  ;;  %v1622_v18 = vpop.permute.xlu0 %1621 }
 0x466   : > { %1410 = vmatpush.msra.mxu2 %v1390_v17  ;;  %2657 = vmatpush.xpose.msk.msra.mxu3 %vm1348_vm4, %v1622_v18 }
 0x468   : > { %1500 = vmatpush.msrb.mxu2 %v1342_v48 }
 0x46d   : > { %v1529_v47 = vpop.permute.xlu0 %1528 }
 0x4d6   : > { %v1370_v20 = vpop.f32.mrf.mxu0 }
 0x4d7   : > { %v1373_v21 = vmul.f32 0.35355338, %v1370_v20 }
 0x4d9   : > { %v1377_v22 = vadd.f32 %v3309_v19, %v1373_v21 }
 0x4db   : > { %v1378_v23 = vsel %vm1348_vm4, %v1377_v22, -inf }
 0x4dc   : > { %1379 = vmax.xlane.f32.xlu2 %v1378_v23  ;;  %v2808_v23 = vld [vmem:[%s3588_s5] ss:$0 sm:$0xff] }
 0x4e1   : > { %v1440_v27 = vpop.f32.mrf.mxu3 }
 0x4e2   : > { %v1443_v29 = vmul.f32 0.35355338, %v1440_v27 }
 0x4e4   : > { %v1444_v31 = vadd.f32 %v3309_v19, %v1443_v29  ;;  %v2996_v29 = vmov 32.0  }
 0x4e6   : > { %v1445_v32 = vsel %vm1348_vm4, %v1444_v31, -inf }
 0x54f   : > { %v1380_v24 = vpop.xlane.xlu2 %1379 }
 0x550   : > { %v1381_v25 = vsub.f32 %v1377_v22, %v1380_v24 }
 0x552   : > { %v1382_v26 = vmul.f32 1.442695, %v1381_v25 }
 0x554   : > { %2841 = vpow2.f32 %v1382_v26 }
 0x55a   : > { %v2842_v28 = vpop.eup %2841 }
 0x55b   : > { %v1384_v30 = vsel %vm1348_vm4, %v2842_v28, 0.0 }
 0x55c   : > { %1385 = vadd.xlane.f32.xlu2 %v1384_v30 }
 0x564   : > { %1446 = vmax.xlane.f32.xlu2 %v1445_v32 }
 0x57c   : > { %1456 = vrot.lane.b32.xlu2 %v3283_v11, %s3530_s13  ;;  %s3531_s13 = smov 40  }
 0x584   : > { %1619 = vrot.lane.b32.xlu2 %v3283_v11, %s3537_s26  ;;  %s3593_s26 = sld [smem:[#allocation25_spill]] }
 0x5cf   : > { %v1386_v33 = vpop.xlane.xlu2 %1385 }
 0x5d0   : > { %2843 = vrcp.f32 %v1386_v33 }
 0x5d6   : > { %v2844_v34 = vpop.eup %2843 }
 0x5d7   : > { %v1388_v35 = vmul.f32 %v2844_v34, %v2842_v28  ;;  %v1447_v36 = vpop.xlane.xlu2 %1446 }
 0x5d8   : > { %v1448_v37 = vsub.f32 %v1444_v31, %v1447_v36 }
 0x5d9   : > { %2647 = vmatmul.msk.f32.vlgmr.msra.gmra.mxu2 %vm1348_vm4, %v1388_v35 }
 0x5da   : > { %v1449_v38 = vmul.f32 1.442695, %v1448_v37 }
 0x5dc   : > { %2845 = vpow2.f32 %v1449_v38 }
 0x5df   : > { %v1457_v39 = vpop.permute.xlu2 %1456 }
 0x5e0   : > { %1477 = vmatpush.msrb.mxu0 %v1457_v39 }
 0x5e2   : > { %2653 = vmatpush.xpose.msk.msra.mxu0 %vm1348_vm4, %v1531_v16  ;;  %v2846_v40 = vpop.eup %2845  ;;  %v1343_v16 = vld [vmem:[%s3586_s3 + $0x10] sm:$0xff] }
 0x5e3   : > { %v1451_v41 = vsel %vm1348_vm4, %v2846_v40, 0.0  ;;  %1613 = vmatpush.msra.mxu2 %v1343_v16 }
 0x5e4   : > { %1452 = vadd.xlane.f32.xlu1 %v1451_v41 }
 0x5e7   : > { %v1620_v46 = vpop.permute.xlu2 %1619 }
 0x657   : > { %v1453_v42 = vpop.xlane.xlu1 %1452 }
 0x658   : > { %2847 = vrcp.f32 %v1453_v42 }
 0x65c   : > { %v1412_v43 = vpop.f32.mrf.mxu2 }
 0x65d   : > { %2652 = vmatmul.msk.f32.vlgmr.msrb.gmra.mxu3 %vm1348_vm4, %v1412_v43 }
 0x65e   : > { %v2848_v44 = vpop.eup %2847 }
 0x65f   : > { %v1455_v45 = vmul.f32 %v2848_v44, %v2846_v40  ;;  %v1794_v44 = vld [vmem:[%s3590_s8 + $0x38] sm:$0xff] }
 0x660   : > { %1811 = vmatpush.msrb.mxu3 %v1794_v44 }
 0x661   : > { %2650 = vmatmul.msk.f32.vlgmr.msrb.gmra.mxu0 %vm1348_vm4, %v1455_v45  ;;  %v1793_v45 = vld [vmem:[%s3590_s8 + $0x30] sm:$0xff] }
 0x662   : > { %1812 = vmatpush.msrb.mxu3 %v1793_v45 }
 0x665   : > { %2658 = vmatmul.msk.f32.vlgmr.msra.gmra.mxu3 %vm1348_vm4, %v1620_v46  ;;  %v1792_v46 = vld [vmem:[%s3590_s8 + $0x28] sm:$0xff] }
 0x666   : > { %1813 = vmatpush.msrb.mxu3 %v1792_v46 }
 0x669   : > { %2654 = vmatmul.msk.f32.vlgmr.msra.gmra.mxu0 %vm1348_vm4, %v1529_v47 }
 0x6de   : > { %v1479_v49 = vpop.f32.mrf.mxu0 }
 0x6df   : > { %2651 = vmatmul.msk.f32.vlgmr.msrb.gmra.mxu2 %vm1348_vm4, %v1479_v49  ;;  %v1791_v49 = vld [vmem:[%s3590_s8 + $0x20] sm:$0xff] }
 0x6e0   : > { %v1525_v50 = vpop.f32.mrf.mxu3  ;;  %1814 = vmatpush.msrb.mxu3 %v1791_v49 }
 0x6e6   : > { %v1553_v51 = vpop.f32.mrf.mxu0 }
 0x6e7   : > { %v1556_v52 = vmul.f32 0.35355338, %v1553_v51  ;;  %v1790_v51 = vld [vmem:[%s3590_s8 + $0x18] sm:$0xff] }
 0x6e8   : > { %v1644_v53 = vpop.f32.mrf.mxu3  ;;  %1815 = vmatpush.msrb.mxu3 %v1790_v51 }
 0x6e9   : > { %v1647_v54 = vmul.f32 0.35355338, %v1644_v53  ;;  %v1557_v55 = vadd.f32 %v3309_v19, %v1556_v52 }
 0x6eb   : > { %v1558_v56 = vsel %vm1348_vm4, %v1557_v55, -inf  ;;  %v1648_v57 = vadd.f32 %v3309_v19, %v1647_v54 }
 0x6ec   : > { %1559 = vmax.xlane.f32.xlu0 %v1558_v56 }
 0x6ed   : > { %v1649_v58 = vsel %vm1348_vm4, %v1648_v57, -inf }
 0x6ee   : > { %1650 = vmax.xlane.f32.xlu2 %v1649_v58  ;;  %v2809_v58 = vld [vmem:[%s3591_s16] ss:$0 sm:$0xff] }
 0x700   : > { %1660 = vrot.lane.b32.xlu0 %v3283_v11, %s3531_s13  ;;  %s3533_s13 = smov 48  }
 0x75f   : > { %v1560_v59 = vpop.xlane.xlu0 %1559 }
 0x760   : > { %v1561_v60 = vsub.f32 %v1557_v55, %v1560_v59 }
 0x761   : > { %v1651_v61 = vpop.xlane.xlu2 %1650 }
 0x762   : > { %v1562_v62 = vmul.f32 1.442695, %v1561_v60  ;;  %v1652_v63 = vsub.f32 %v1648_v57, %v1651_v61  ;;  %v1502_v18 = vpop.f32.mrf.mxu2  ;;  %v2810_v61 = vld [vmem:[%s3572_s4] ss:$0 sm:$0xff] }
 0x763   : > { %v1526_v20 = vadd.f32 %v1525_v50, %v1502_v18  ;;  %v2666_v18 = vld [vmem:[%s3583_s10 + $0x38] sm:$0xff] }
 0x764   : > { %2849 = vpow2.f32 %v1562_v62  ;;  %v1653_v0 = vmul.f32 1.442695, %v1652_v63 }
 0x766   : > { %2851 = vpow2.f32 %v1653_v0  ;;  %v1789_v0 = vld [vmem:[%s3590_s8 + $0x10] sm:$0xff] }
 0x767   : > { %1816 = vmatpush.msrb.mxu3 %v1789_v0 }
 0x76a   : > { %v2850_v1 = vpop.eup %2849 }
 0x76b   : > { %v1564_v2 = vsel %vm1348_vm4, %v2850_v1, 0.0 }
 0x76c   : > { %1565 = vadd.xlane.f32.xlu1 %v1564_v2  ;;  %v2852_v3 = vpop.eup %2851  ;;  %v1787_v2 = vld [vmem:[%s3590_s8] sm:$0xff] }
 0x76d   : > { %v1655_v5 = vsel %vm1348_vm4, %v2852_v3, 0.0 }
 0x772   : > { %v1661_v4 = vpop.permute.xlu0 %1660 }
 0x773   : > { %1681 = vmatpush.msrb.mxu0 %v1661_v4 }
 0x774   : > { %1656 = vadd.xlane.f32.xlu1 %v1655_v5 }
 0x775   : > { %1881 = vmatpush.msra.mxu0 %v2666_v18 }
 0x78d   : > { %1569 = vrot.lane.b32.xlu1 %v3283_v11, %s3533_s13  ;;  %s3589_s13 = sld [smem:[#allocation22_spill]] }
 0x793   : > { %v1758_v40 = vld [vmem:[%s3589_s13 + $0x18] sm:$0xff]  ;;  %v1757_v41 = vld [vmem:[%s3589_s13 + $0x10] sm:$0xff]  ;;  %v1756_v42 = vld [vmem:[%s3589_s13 + $0x8] sm:$0xff] }
 0x794   : > { %1778 = vmatpush.msrb.mxu2 %v1758_v40  ;;  %v1755_v43 = vld [vmem:[%s3589_s13] sm:$0xff] }
 0x796   : > { %1779 = vmatpush.msrb.mxu2 %v1757_v41 }
 0x798   : > { %1780 = vmatpush.msrb.mxu2 %v1756_v42 }
 0x79a   : > { %1781 = vmatpush.msrb.mxu2 %v1755_v43 }
 0x7df   : > { %v1566_v6 = vpop.xlane.xlu1 %1565 }
 0x7e7   : > { %v1657_v7 = vpop.xlane.xlu1 %1656 }
 0x7e8   : > { %2853 = vrcp.f32 %v1657_v7  ;;  %v2812_v7 = vld [vmem:[%s3593_s26] ss:$0 sm:$0xff] }
 0x7e9   : > { %2855 = vrcp.f32 %v1566_v6 }
 0x7ea   : > { %2857 = vrcp.f32 %v2996_v29 }
 0x7ee   : > { %v2854_v9 = vpop.eup %2853 }
 0x7ef   : > { %v1659_v10 = vmul.f32 %v2854_v9, %v2852_v3  ;;  %v2856_v12 = vpop.eup %2855  ;;  %v2811_v3 = vld [vmem:[%s3592_s12] ss:$0 sm:$0xff] }
 0x7f0   : > { %v1568_v14 = vmul.f32 %v2856_v12, %v2850_v1  ;;  %v2858_v30 = vpop.eup %2857  ;;  %v1788_v1 = vld [vmem:[%s3590_s8 + $0x8] sm:$0xff] }
 0x7f1   : > { %2659 = vmatmul.msk.f32.vlgmr.msrb.gmra.mxu0 %vm1348_vm4, %v1659_v10  ;;  %v1722_v31 = vmul.f32 32.0, %v2858_v30  ;;  %vm1726_vm6 = vweird.f32 %v2858_v30  ;;  %1817 = vmatpush.msrb.mxu3 %v1788_v1 }
 0x7f3   : > { %v1723_v32 = vsub.f32 1.0, %v1722_v31  ;;  %1818 = vmatpush.msrb.mxu3 %v1787_v2 }
 0x7f5   : > { %v1724_v33 = vmul.f32 %v2858_v30, %v1723_v32  ;;  %v2813_v32 = vld [vmem:[%s3571_s9] ss:$0 sm:$0xff] }
 0x7f7   : > { %v1725_v34 = vadd.f32 %v2858_v30, %v1724_v33 }
 0x7f9   : > { %v3348_v35 = vsel %vm1726_vm6, %v2858_v30, %v1725_v34 }
 0x7ff   : > { %v1570_v13 = vpop.permute.xlu1 %1569 }
 0x800   : > { %1590 = vmatpush.msrb.mxu1 %v1570_v13 }
 0x801   : > { %2655 = vmatmul.msk.f32.vlgmr.msrb.gmra.mxu1 %vm1348_vm4, %v1568_v14 }
 0x802   : > { %1704 = vmatpush.msra.mxu1 %v1344_v15 }
 0x86e   : > { %v1683_v11 = vpop.f32.mrf.mxu0 }
 0x86f   : > { %2660 = vmatmul.msk.f32.vlgmr.msra.gmra.mxu1 %vm1348_vm4, %v1683_v11 }
 0x87e   : > { %v1592_v17 = vpop.f32.mrf.mxu1 }
 0x87f   : > { %2656 = vmatmul.msk.f32.vlgmr.msra.gmra.mxu2 %vm1348_vm4, %v1592_v17 }
 0x8ec   : > { %v1706_v24 = vpop.f32.mrf.mxu1 }
 0x902   : > { %v1615_v21 = vpop.f32.mrf.mxu2 }
 0x903   : > { %v1618_v22 = vadd.f32 %v1615_v21, %v1526_v20  ;;  %v2665_v20 = vld [vmem:[%s3583_s10 + $0x30] sm:$0xff]  ;;  %v2664_v21 = vld [vmem:[%s3583_s10 + $0x28] sm:$0xff] }
 0x904   : > { %1882 = vmatpush.msra.mxu0 %v2665_v20 }
 0x905   : > { %v1709_v25 = vadd.f32 %v1706_v24, %v1618_v22  ;;  %v2663_v22 = vld [vmem:[%s3583_s10 + $0x20] sm:$0xff]  ;;  %s3595_s10 = smov 96  }
 0x906   : > { %1883 = vmatpush.msra.mxu0 %v2664_v21 }
 0x907   : > { %v1714_v26 = vadd.f32 %v2808_v23, %v1709_v25 }
 0x908   : > { %1884 = vmatpush.msra.mxu0 %v2663_v22 }
 0x909   : > { %v1715_v27 = vadd.f32 %v1714_v26, %v3278_v8 }
 0x90b   : > { %v1718_v28 = vsel %vm1021_vm0, %v1715_v27, 0.0 }
 0x90c   : > { %1719 = vadd.xlane.f32.xlu2 %v1718_v28 }
 0x97f   : > { %v1720_v8 = vpop.xlane.xlu2 %1719 }
 0x980   : > { %v1728_v36 = vmul.f32 %v3348_v35, %v1720_v8  ;;  %v2814_v8 = vld [vmem:[%s3160_s20] ss:$0 sm:$0xff] }
 0x982   : > { %v1729_v37 = vsub.f32 %v1715_v27, %v1728_v36 }
 0x984   : > { %v1730_v38 = vmul.f32 %v1729_v37, %v1729_v37 }
 0x986   : > { %v1731_v39 = vsel %vm1021_vm0, %v1730_v38, 0.0  ;;  %v2815_v38 = vld [vmem:[%s3585_s15 + $0x1] ss:$0 sm:$0xff]  ;;  %s3600_s15 = smov 112  }
 0x987   : > { %1732 = vadd.xlane.f32.xlu2 %v1731_v39 }
 0x9fa   : > { %v1733_v47 = vpop.xlane.xlu2 %1732 }
 0x9fb   : > { %v1734_v48 = vmul.f32 %v1733_v47, %v3348_v35 }
 0x9fd   : > { %v1735_v50 = vadd.f32 1e-05, %v1734_v48 }
 0x9ff   : > { %2859 = vrsqrt.f32 %v1735_v50  ;;  %vm1742_vm8 = vweird.f32 %v1735_v50 }
 0xa05   : > { %v2860_v52 = vpop.eup %2859 }
 0xa06   : > { %v1737_v53 = vmul.f32 %v2860_v52, %v1735_v50  ;;  %vm1743_vm7 = vweird.f32 %v2860_v52 }
 0xa07   : > { %vm1744_vm9 = vmor %vm1742_vm8, %vm1743_vm7 }
 0xa08   : > { %v1738_v54 = vmul.f32 %v2860_v52, %v1737_v53 }
 0xa0a   : > { %v1739_v55 = vmul.f32 0.5, %v1738_v54 }
 0xa0c   : > { %v1740_v56 = vsub.f32 1.5, %v1739_v55 }
 0xa0e   : > { %v1741_v57 = vmul.f32 %v2860_v52, %v1740_v56  ;;  %v2669_v56 = vld [vmem:[%s3586_s3 + $0x20] sm:$0xff] }
 0xa0f   : > { %2068 = vmatpush.msra.mxu3 %v2669_v56 }
 0xa10   : > { %v1745_v59 = vsel %vm1744_vm9, %v2860_v52, %v1741_v57 }
 0xa11   : > { %v1746_v60 = vmul.f32 %v1745_v59, %v1729_v37 }
 0xa13   : > { %v1750_v62 = vmul.f32 %v2809_v58, %v1746_v60 }
 0xa15   : > { %v1754_v63 = vadd.f32 %v2810_v61, %v1750_v62 }
 0xa17   : > { %2661 = vmatmul.msk.f32.vlgmr.msrb.gmra.mxu2 %vm1021_vm0, %v1754_v63 }
 0xa9a   : > { %v1783_v4 = vpop.f32.mrf.mxu2 }
 0xa9b   : > { %v1784_v5 = vadd.f32 %v2811_v3, %v1783_v4 }
 0xa9d   : > { %v1786_v6 = vmax.f32 %v1784_v5, 0.0 }
 0xa9f   : > { %2662 = vmatmul.msk.f32.vlgmr.msrb.gmra.mxu3 %vm1799_vm10, %v1786_v6 }
 0xb22   : > { %v1820_v9 = vpop.f32.mrf.mxu3 }
 0xb23   : > { %v1821_v10 = vadd.f32 %v2812_v7, %v1820_v9 }
 0xb25   : > { %v1823_v12 = vadd.f32 %v1821_v10, %v1754_v63 }
 0xb27   : > { %v1826_v13 = vsel %vm1021_vm0, %v1823_v12, 0.0 }
 0xb28   : > { %1827 = vadd.xlane.f32.xlu1 %v1826_v13 }
 0xb9b   : > { %v1828_v14 = vpop.xlane.xlu1 %1827 }
 0xb9c   : > { %v1829_v15 = vmul.f32 %v1828_v14, %v3348_v35 }
 0xb9e   : > { %v1830_v16 = vsub.f32 %v1823_v12, %v1829_v15 }
 0xba0   : > { %v1831_v11 = vmul.f32 %v1830_v16, %v1830_v16 }
 0xba2   : > { %v1832_v17 = vsel %vm1021_vm0, %v1831_v11, 0.0 }
 0xba3   : > { %1833 = vadd.xlane.f32.xlu2 %v1832_v17 }
 0xc16   : > { %v1834_v23 = vpop.xlane.xlu2 %1833 }
 0xc17   : > { %v1835_v24 = vmul.f32 %v1834_v23, %v3348_v35 }
 0xc19   : > { %v1836_v25 = vadd.f32 1e-05, %v1835_v24 }
 0xc1b   : > { %2861 = vrsqrt.f32 %v1836_v25  ;;  %vm1843_vm12 = vweird.f32 %v1836_v25 }
 0xc21   : > { %v2862_v26 = vpop.eup %2861 }
 0xc22   : > { %v1838_v27 = vmul.f32 %v2862_v26, %v1836_v25  ;;  %vm1844_vm11 = vweird.f32 %v2862_v26 }
 0xc23   : > { %vm1845_vm13 = vmor %vm1843_vm12, %vm1844_vm11 }
 0xc24   : > { %v1839_v28 = vmul.f32 %v2862_v26, %v1838_v27 }
 0xc26   : > { %v1840_v29 = vmul.f32 0.5, %v1839_v28 }
 0xc28   : > { %v1841_v30 = vsub.f32 1.5, %v1840_v29 }
 0xc2a   : > { %v1842_v31 = vmul.f32 %v2862_v26, %v1841_v30 }
 0xc2c   : > { %v1846_v33 = vsel %vm1845_vm13, %v2862_v26, %v1842_v31 }
 0xc2d   : > { %v1847_v34 = vmul.f32 %v1846_v33, %v1830_v16 }
 0xc2f   : > { %v1851_v36 = vmul.f32 %v2813_v32, %v1847_v34 }
 0xc31   : > { %v3381_v37 = vadd.f32 %v2814_v8, %v1851_v36  ;;  %v2670_v36 = vld [vmem:[%s3586_s3 + $0x28] sm:$0xff] }
 0xc33   : > { %2668 = vmatmul.msk.f32.vlgmr.msra.gmra.mxu0 %vm1021_vm0, %v3381_v37 }
 0xcb0   : > { %v1886_v39 = vpop.f32.mrf.mxu0 }
 0xcb1   : > { %v3386_v40 = vadd.f32 %v2815_v38, %v1886_v39  ;;  %v2671_v38 = vld [vmem:[%s3586_s3 + $0x30] sm:$0xff] }
 0xcb3   : > { %1962 = vrot.lane.b32.xlu1 %v3386_v40, %s3594_s6  ;;  %1895 = vrot.lane.b32.xlu0 %v3386_v40, %s3595_s10  ;;  %s3597_s6 = smov 64   ;;  %s3599_s10 = smov 80  }
 0xcbb   : > { %2164 = vrot.lane.b32.xlu1 %v3386_v40, %s3596_s14  ;;  %s3598_s14 = smov 120  }
 0xd25   : > { %v1963_v41 = vpop.permute.xlu1 %1962  ;;  %v1896_v42 = vpop.permute.xlu0 %1895 }
 0xd26   : > { %2673 = vmatpush.xpose.msk.msrb.mxu1 %vm1348_vm4, %v1896_v42  ;;  %2676 = vmatpush.xpose.msk.msrb.mxu0 %vm1348_vm4, %v1963_v41 }
 0xd29   : > { %2674 = vmatmul.msk.f32.vlgmr.msrb.gmra.mxu1 %vm1348_vm4, %v3386_v40 }
 0xd2d   : > { %v2165_v10 = vpop.permute.xlu1 %2164 }
 0xda6   : > { %v1918_v43 = vpop.f32.mrf.mxu1 }
 0xda7   : > { %v1921_v44 = vmul.f32 0.35355338, %v1918_v43 }
 0xda9   : > { %v1922_v45 = vadd.f32 %v3309_v19, %v1921_v44 }
 0xdab   : > { %v1923_v46 = vsel %vm1348_vm4, %v1922_v45, -inf }
 0xdac   : > { %1924 = vmax.xlane.f32.xlu2 %v1923_v46 }
 0xdc4   : > { %1934 = vrot.lane.b32.xlu2 %v3386_v40, %s3597_s6  ;;  %s3601_s6 = smov 72  }
 0xdcc   : > { %1960 = vrot.lane.b32.xlu2 %v3386_v40, %s3598_s14  ;;  %s3603_s14 = smov 56  }
 0xdd4   : > { %2075 = vrot.lane.b32.xlu2 %v3386_v40, %s3599_s10  ;;  %s3604_s10 = smov 40  }
 0xddc   : > { %2073 = vrot.lane.b32.xlu2 %v3386_v40, %s3600_s15  ;;  %s3602_s15 = smov 48  }
 0xe1f   : > { %v1925_v47 = vpop.xlane.xlu2 %1924 }
 0xe20   : > { %v1926_v48 = vsub.f32 %v1922_v45, %v1925_v47 }
 0xe22   : > { %v1927_v49 = vmul.f32 1.442695, %v1926_v48 }
 0xe24   : > { %2863 = vpow2.f32 %v1927_v49 }
 0xe27   : > { %v1935_v50 = vpop.permute.xlu2 %1934 }
 0xe28   : > { %1955 = vmatpush.msra.mxu2 %v1935_v50 }
 0xe2a   : > { %v2864_v51 = vpop.eup %2863  ;;  %2045 = vmatpush.msrb.mxu2 %v2670_v36 }
 0xe2b   : > { %v1929_v52 = vsel %vm1348_vm4, %v2864_v51, 0.0 }
 0xe2c   : > { %1930 = vadd.xlane.f32.xlu0 %v1929_v52 }
 0xe2f   : > { %v1961_v53 = vpop.permute.xlu2 %1960 }
 0xe30   : > { %2677 = vmatmul.msk.f32.vlgmr.msrb.gmra.mxu0 %vm1348_vm4, %v1961_v53 }
 0xe37   : > { %v2076_v54 = vpop.permute.xlu2 %2075 }
 0xe38   : > { %2681 = vmatpush.xpose.msk.msra.mxu0 %vm1348_vm4, %v2076_v54 }
 0xe3f   : > { %v2074_v55 = vpop.permute.xlu2 %2073 }
 0xe40   : > { %2166 = vrot.lane.b32.xlu0 %v3386_v40, %s3601_s6  ;;  %2682 = vmatmul.msk.f32.vlgmr.msra.gmra.mxu0 %vm1348_vm4, %v2074_v55  ;;  %s3605_s6 = sld [smem:[#allocation14_spill]] }
 0xe9f   : > { %v1931_v57 = vpop.xlane.xlu0 %1930 }
 0xea0   : > { %2865 = vrcp.f32 %v1931_v57 }
 0xea6   : > { %v2866_v58 = vpop.eup %2865 }
 0xea7   : > { %v1933_v59 = vmul.f32 %v2866_v58, %v2864_v51  ;;  %v2816_v51 = vld [vmem:[%s3588_s5 + $0x1] ss:$0 sm:$0xff] }
 0xea9   : > { %2675 = vmatmul.msk.f32.vlgmr.msra.gmra.mxu2 %vm1348_vm4, %v1933_v59 }
 0xeaa   : > { %2158 = vmatpush.msra.mxu2 %v2671_v38 }
 0xead   : > { %v1985_v60 = vpop.f32.mrf.mxu0 }
 0xeae   : > { %v1988_v61 = vmul.f32 0.35355338, %v1985_v60 }
 0xeb0   : > { %v1989_v62 = vadd.f32 %v3309_v19, %v1988_v61 }
 0xeb2   : > { %v2167_v63 = vpop.permute.xlu0 %2166  ;;  %v1990_v0 = vsel %vm1348_vm4, %v1989_v62, -inf }
 0xeb3   : > { %2685 = vmatpush.xpose.msk.msrb.mxu3 %vm1348_vm4, %v2167_v63  ;;  %1991 = vmax.xlane.f32.xlu2 %v1990_v0  ;;  %v2694_v63 = vld [vmem:[%s3589_s13 + $0x30] sm:$0xff]  ;;  %v2692_v0 = vld [vmem:[%s3589_s13 + $0x20] sm:$0xff] }
 0xebd   : > { %v2098_v1 = vpop.f32.mrf.mxu0 }
 0xebe   : > { %v2101_v2 = vmul.f32 0.35355338, %v2098_v1  ;;  %v2705_v1 = vld [vmem:[%s3590_s8 + $0x78] sm:$0xff] }
 0xec0   : > { %v2102_v3 = vadd.f32 %v3309_v19, %v2101_v2  ;;  %v2704_v2 = vld [vmem:[%s3590_s8 + $0x70] sm:$0xff] }
 0xec2   : > { %v2103_v4 = vsel %vm1348_vm4, %v2102_v3, -inf }
 0xec3   : > { %2104 = vmax.xlane.f32.xlu1 %v2103_v4 }
 0xf26   : > { %v1992_v5 = vpop.xlane.xlu2 %1991 }
 0xf27   : > { %v1993_v6 = vsub.f32 %v1989_v62, %v1992_v5  ;;  %v2695_v62 = vld [vmem:[%s3589_s13 + $0x38] sm:$0xff] }
 0xf29   : > { %v1994_v7 = vmul.f32 1.442695, %v1993_v6  ;;  %v2702_v6 = vld [vmem:[%s3590_s8 + $0x60] sm:$0xff] }
 0xf2b   : > { %2867 = vpow2.f32 %v1994_v7 }
 0xf2c   : > { %v1957_v9 = vpop.f32.mrf.mxu2 }
 0xf2d   : > { %2680 = vmatmul.msk.f32.vlgmr.msra.gmra.mxu3 %vm1348_vm4, %v1957_v9  ;;  %v2701_v9 = vld [vmem:[%s3590_s8 + $0x58] sm:$0xff] }
 0xf2e   : > { %2355 = vmatpush.msra.mxu3 %v2705_v1 }
 0xf30   : > { %2356 = vmatpush.msra.mxu3 %v2704_v2 }
 0xf31   : > { %v2868_v12 = vpop.eup %2867 }
 0xf32   : > { %v1996_v13 = vsel %vm1348_vm4, %v2868_v12, 0.0 }
 0xf33   : > { %1997 = vadd.xlane.f32.xlu2 %v1996_v13 }
 0xf35   : > { %2686 = vmatmul.msk.f32.vlgmr.msrb.gmra.mxu3 %vm1348_vm4, %v2165_v10 }
 0xf36   : > { %v2105_v14 = vpop.xlane.xlu1 %2104 }
 0xf37   : > { %v2106_v15 = vsub.f32 %v2102_v3, %v2105_v14  ;;  %v2703_v3 = vld [vmem:[%s3590_s8 + $0x68] sm:$0xff] }
 0xf38   : > { %2357 = vmatpush.msra.mxu3 %v2703_v3 }
 0xf39   : > { %v2107_v16 = vmul.f32 1.442695, %v2106_v15 }
 0xf3a   : > { %2358 = vmatpush.msra.mxu3 %v2702_v6 }
 0xf3b   : > { %2869 = vpow2.f32 %v2107_v16 }
 0xf3c   : > { %2359 = vmatpush.msra.mxu3 %v2701_v9 }
 0xf41   : > { %v2870_v11 = vpop.eup %2869 }
 0xf42   : > { %v2109_v17 = vsel %vm1348_vm4, %v2870_v11, 0.0 }
 0xf43   : > { %2110 = vadd.xlane.f32.xlu1 %v2109_v17 }
 0xf5c   : > { %2114 = vrot.lane.b32.xlu1 %v3386_v40, %s3602_s15  ;;  %s3606_s15 = sld [smem:[#allocation16_spill]] }
 0xfa6   : > { %v1998_v27 = vpop.xlane.xlu2 %1997 }
 0xfb0   : > { %v2070_v18 = vpop.f32.mrf.mxu3 }
 0xfb6   : > { %v2111_v30 = vpop.xlane.xlu1 %2110 }
 0xfb8   : > { %v2189_v20 = vpop.f32.mrf.mxu3 }
 0xfb9   : > { %v2192_v21 = vmul.f32 0.35355338, %v2189_v20  ;;  %v2818_v20 = vld [vmem:[%s3572_s4 + $0x1] ss:$0 sm:$0xff] }
 0xfbb   : > { %v2193_v22 = vadd.f32 %v3309_v19, %v2192_v21 }
 0xfbd   : > { %v2194_v23 = vsel %vm1348_vm4, %v2193_v22, -inf }
 0xfbe   : > { %2195 = vmax.xlane.f32.xlu0 %v2194_v23  ;;  %v2700_v23 = vld [vmem:[%s3590_s8 + $0x50] sm:$0xff] }
 0xfbf   : > { %2360 = vmatpush.msra.mxu3 %v2700_v23 }
 0xfce   : > { %v2115_v33 = vpop.permute.xlu1 %2114 }
 0xfd2   : > { %2001 = vrot.lane.b32.xlu0 %v3386_v40, %s3603_s14  ;;  %s3607_s14 = sld [smem:[#allocation15_spill]] }
0x1031   : > { %v2196_v24 = vpop.xlane.xlu0 %2195 }
0x1032   : > { %v2197_v25 = vsub.f32 %v2193_v22, %v2196_v24  ;;  %v2699_v24 = vld [vmem:[%s3590_s8 + $0x48] sm:$0xff] }
0x1033   : > { %2361 = vmatpush.msra.mxu3 %v2699_v24 }
0x1034   : > { %v2198_v26 = vmul.f32 1.442695, %v2197_v25  ;;  %v2698_v25 = vld [vmem:[%s3590_s8 + $0x40] sm:$0xff] }
0x1035   : > { %2362 = vmatpush.msra.mxu3 %v2698_v25 }
0x1036   : > { %2871 = vpow2.f32 %v2198_v26  ;;  %v2819_v26 = vld [vmem:[%s3592_s12 + $0x1] ss:$0 sm:$0xff] }
0x1037   : > { %2873 = vrcp.f32 %v1998_v27 }
0x1038   : > { %2875 = vrcp.f32 %v2111_v30  ;;  %v2820_v30 = vld [vmem:[%s3593_s26 + $0x1] ss:$0 sm:$0xff] }
0x103c   : > { %v2872_v28 = vpop.eup %2871 }
0x103d   : > { %v2200_v29 = vsel %vm1348_vm4, %v2872_v28, 0.0  ;;  %v2874_v19 = vpop.eup %2873 }
0x103e   : > { %2201 = vadd.xlane.f32.xlu2 %v2200_v29  ;;  %v2000_v31 = vmul.f32 %v2874_v19, %v2868_v12  ;;  %v2876_v34 = vpop.eup %2875 }
0x103f   : > { %v2113_v8 = vmul.f32 %v2876_v34, %v2870_v11  ;;  %v2817_v11 = vld [vmem:[%s3591_s16 + $0x1] ss:$0 sm:$0xff] }
0x1044   : > { %v2002_v32 = vpop.permute.xlu0 %2001 }
0x1045   : > { %2022 = vmatpush.msra.mxu1 %v2002_v32 }
0x1046   : > { %2678 = vmatmul.msk.f32.vlgmr.msra.gmra.mxu1 %vm1348_vm4, %v2000_v31 }
0x1047   : > { %2135 = vmatpush.msrb.mxu1 %v2115_v33 }
0x104e   : > { %2683 = vmatmul.msk.f32.vlgmr.msrb.gmra.mxu1 %vm1348_vm4, %v2113_v8 }
0x1056   : > { %2205 = vrot.lane.b32.xlu2 %v3386_v40, %s3604_s10  ;;  %v2672_v40 = vld [vmem:[%s3586_s3 + $0x38] sm:$0xff]  ;;  %s3608_s10 = sld [smem:[#allocation17_spill]]  ;;  %s2713_s3 = sshll.u32 %s3188_s0, 3 }
0x1057   : > { %2249 = vmatpush.msra.mxu1 %v2672_v40  ;;  %v2423_v40 = vld [vmem:[%s3605_s6 + $0x8] sm:$0xff]  ;;  %s2517_s4 = scalar_lea.hbm %s3165_s27, %s2713_s3 }
0x1058   : > { %s2521_s8 = sshll.u32 %s2517_s4, 4  ;;  %s2522_s8 = int_to_ptr.hbm [resolvable:$true] %s2521_s8 }
0x10b1   : > { %v2202_v39 = vpop.xlane.xlu2 %2201 }
0x10b2   : > { %2877 = vrcp.f32 %v2202_v39 }
0x10b8   : > { %v2878_v41 = vpop.eup %2877 }
0x10b9   : > { %v2204_v42 = vmul.f32 %v2878_v41, %v2872_v28  ;;  %v2206_v43 = vpop.permute.xlu2 %2205 }
0x10ba   : > { %2226 = vmatpush.msrb.mxu0 %v2206_v43 }
0x10bb   : > { %2687 = vmatmul.msk.f32.vlgmr.msrb.gmra.mxu0 %vm1348_vm4, %v2204_v42 }
0x10c3   : > { %v2024_v44 = vpop.f32.mrf.mxu1 }
0x10c4   : > { %2679 = vmatmul.msk.f32.vlgmr.msrb.gmra.mxu2 %vm1348_vm4, %v2024_v44  ;;  %v2425_v44 = vld [vmem:[%s3605_s6 + $0x18] sm:$0xff] }
0x10c5   : > { %2321 = vmatpush.msrb.mxu2 %v2695_v62  ;;  %2445 = vmatpush.msra.mxu0 %v2425_v44 }
0x10c7   : > { %2322 = vmatpush.msrb.mxu2 %v2694_v63 }
0x10cb   : > { %v2137_v45 = vpop.f32.mrf.mxu1 }
0x10cc   : > { %2684 = vmatmul.msk.f32.vlgmr.msra.gmra.mxu2 %vm1348_vm4, %v2137_v45  ;;  %v2424_v45 = vld [vmem:[%s3605_s6 + $0x10] sm:$0xff] }
0x10cd   : > { %2446 = vmatpush.msra.mxu0 %v2424_v45 }
0x10cf   : > { %2447 = vmatpush.msra.mxu0 %v2423_v40 }
0x1138   : > { %v2228_v46 = vpop.f32.mrf.mxu0 }
0x1139   : > { %2688 = vmatmul.msk.f32.vlgmr.msra.gmra.mxu1 %vm1348_vm4, %v2228_v46 }
0x1147   : > { %v2047_v47 = vpop.f32.mrf.mxu2 }
0x1148   : > { %v2071_v49 = vadd.f32 %v2070_v18, %v2047_v47 }
0x114f   : > { %v2160_v48 = vpop.f32.mrf.mxu2 }
0x1150   : > { %v2163_v50 = vadd.f32 %v2160_v48, %v2071_v49  ;;  %v2422_v48 = vld [vmem:[%s3605_s6] sm:$0xff] }
0x1151   : > { %2448 = vmatpush.msra.mxu0 %v2422_v48 }
0x11b6   : > { %v2251_v52 = vpop.f32.mrf.mxu1 }
0x11b7   : > { %v2254_v53 = vadd.f32 %v2251_v52, %v2163_v50 }
0x11b9   : > { %v2260_v54 = vadd.f32 %v2816_v51, %v2254_v53 }
0x11bb   : > { %v2261_v55 = vadd.f32 %v2260_v54, %v3381_v37  ;;  %v2693_v37 = vld [vmem:[%s3589_s13 + $0x28] sm:$0xff]  ;;  %v2822_v54 = vld [vmem:[%s3160_s20 + $0x1] ss:$0 sm:$0xff] }
0x11bc   : > { %2323 = vmatpush.msrb.mxu2 %v2693_v37 }
0x11bd   : > { %v2266_v56 = vsel %vm1021_vm0, %v2261_v55, 0.0 }
0x11be   : > { %2267 = vadd.xlane.f32.xlu0 %v2266_v56  ;;  %2324 = vmatpush.msrb.mxu2 %v2692_v0 }
0x1231   : > { %v2268_v57 = vpop.xlane.xlu0 %2267 }
0x1232   : > { %v2269_v58 = vmul.f32 %v2268_v57, %v3348_v35 }
0x1234   : > { %v2270_v59 = vsub.f32 %v2261_v55, %v2269_v58 }
0x1236   : > { %v2271_v60 = vmul.f32 %v2270_v59, %v2270_v59 }
0x1238   : > { %v2272_v61 = vsel %vm1021_vm0, %v2271_v60, 0.0 }
0x1239   : > { %2273 = vadd.xlane.f32.xlu1 %v2272_v61 }
0x12ac   : > { %v2274_v4 = vpop.xlane.xlu1 %2273 }
0x12ad   : > { %v2275_v5 = vmul.f32 %v2274_v4, %v3348_v35 }
0x12af   : > { %v2276_v7 = vadd.f32 1e-05, %v2275_v5 }
0x12b1   : > { %2879 = vrsqrt.f32 %v2276_v7  ;;  %vm2283_vm15 = vweird.f32 %v2276_v7 }
0x12b7   : > { %v2880_v10 = vpop.eup %2879 }
0x12b8   : > { %v2278_v12 = vmul.f32 %v2880_v10, %v2276_v7  ;;  %vm2284_vm14 = vweird.f32 %v2880_v10 }
0x12b9   : > { %vm2285_vm1 = vmor %vm2283_vm15, %vm2284_vm14 }
0x12ba   : > { %v2279_v13 = vmul.f32 %v2880_v10, %v2278_v12  ;;  %v2457_v12 = vld [vmem:[%s3606_s15 + $0x18] sm:$0xff] }
0x12bb   : > { %2477 = vmatpush.msrb.mxu1 %v2457_v12 }
0x12bc   : > { %v2280_v14 = vmul.f32 0.5, %v2279_v13  ;;  %v2456_v13 = vld [vmem:[%s3606_s15 + $0x10] sm:$0xff] }
0x12bd   : > { %2478 = vmatpush.msrb.mxu1 %v2456_v13 }
0x12be   : > { %v2281_v15 = vsub.f32 1.5, %v2280_v14  ;;  %v2455_v14 = vld [vmem:[%s3606_s15 + $0x8] sm:$0xff] }
0x12bf   : > { %2479 = vmatpush.msrb.mxu1 %v2455_v14 }
0x12c0   : > { %v2282_v16 = vmul.f32 %v2880_v10, %v2281_v15  ;;  %v2454_v15 = vld [vmem:[%s3606_s15] sm:$0xff] }
0x12c1   : > { %2480 = vmatpush.msrb.mxu1 %v2454_v15 }
0x12c2   : > { %v2286_v17 = vsel %vm2285_vm1, %v2880_v10, %v2282_v16  ;;  %v2823_v16 = vld [vmem:[%s3607_s14] ss:$0 sm:$0xff]  ;;  %s997_s14 = sand.u32 1, %s2943_s1  }
0x12c3   : > { %v2287_v18 = vmul.f32 %v2286_v17, %v2270_v59  ;;  %s2507_s0 = scalar_lea.sflag [#allocation3], %s997_s14 }
0x12c5   : > { %v2291_v21 = vmul.f32 %v2817_v11, %v2287_v18 }
0x12c7   : > { %v2295_v22 = vadd.f32 %v2818_v20, %v2291_v21  ;;  %v2824_v20 = vld [vmem:[%s3608_s10] ss:$0 sm:$0xff]  ;;  %s2635_s10 = sshll.u32 %s997_s14, 3 }
0x12c8   : > { %s999_s5 = scalar_lea.vmem [#allocation2], %s2635_s10  ;;  %s2909_s10 = scalar_lea.hbm %s3165_s27, 16 }
0x12c9   : > { %2697 = vmatmul.msk.f32.vlgmr.msrb.gmra.mxu2 %vm1021_vm0, %v2295_v22  ;;  %s2519_s6 = sshll.u32 %s999_s5, 4  ;;  %s2520_s6 = int_to_ptr.vmem [resolvable:$true] %s2519_s6 }
0x134c   : > { %v2326_v27 = vpop.f32.mrf.mxu2 }
0x134d   : > { %v2327_v28 = vadd.f32 %v2819_v26, %v2326_v27 }
0x134f   : > { %v2329_v29 = vmax.f32 %v2327_v28, 0.0 }
0x1351   : > { %2707 = vmatmul.msk.f32.vlgmr.msra.gmra.mxu3 %vm1799_vm10, %v2329_v29 }
0x13d4   : > { %v2364_v19 = vpop.f32.mrf.mxu3 }
0x13d5   : > { %v2365_v31 = vadd.f32 %v2820_v30, %v2364_v19 }
0x13d7   : > { %v2367_v32 = vadd.f32 %v2365_v31, %v2295_v22 }
0x13d9   : > { %v2372_v33 = vsel %vm1021_vm0, %v2367_v32, 0.0 }
0x13da   : > { %2373 = vadd.xlane.f32.xlu2 %v2372_v33 }
0x144d   : > { %v2374_v34 = vpop.xlane.xlu2 %2373 }
0x144e   : > { %v2375_v8 = vmul.f32 %v2374_v34, %v3348_v35 }
0x1450   : > { %v2376_v36 = vsub.f32 %v2367_v32, %v2375_v8 }
0x1452   : > { %v2377_v38 = vmul.f32 %v2376_v36, %v2376_v36 }
0x1454   : > { %v2378_v39 = vsel %vm1021_vm0, %v2377_v38, 0.0 }
0x1455   : > { %2379 = vadd.xlane.f32.xlu0 %v2378_v39 }
0x14c8   : > { %v2380_v41 = vpop.xlane.xlu0 %2379 }
0x14c9   : > { %v2381_v42 = vmul.f32 %v2380_v41, %v3348_v35  ;;  %v2821_v35 = vld [vmem:[%s3571_s9 + $0x1] ss:$0 sm:$0xff]  ;;  %s2903_s9 = sshra.s32 %s2522_s8, 4  ;;  %s2904_s9 = int_to_ptr.hbm [resolvable:$true] %s2903_s9 }
0x14ca   : > { %s2905_s3 = scalar_lea.hbm %s2904_s9, 8  ;;  %p2910_p0 = scmp.lt.s32.totalorder %s2904_s9, %s3165_s27 }
0x14cb   : > { %v2382_v43 = vadd.f32 1e-05, %v2381_v42  ;;  %p2906_p11 = scmp.ne.s32.totalorder %s2904_s9, %s2905_s3  ;;  %p2911_p1 = scmp.lt.s32.totalorder %s2909_s10, %s2905_s3 }
0x14cd   : > { %2881 = vrsqrt.f32 %v2382_v43  ;;  %vm2389_vm3 = vweird.f32 %v2382_v43  ;;  %p2907_p12 = pnand %p2906_p11, %p3205_p5  ;;  %p2912_p2 = por %p2911_p1, %p2910_p0 }
0x14cf   : > { %p2908_p13 = pneg %p2907_p12 }
0x14d1   : > { %p2913_p3 = pnand %p2912_p2, %p2908_p13 }
0x14d3   : > { %v2882_v46 = vpop.eup %2881 }
0x14d4   : > { %v2384_v47 = vmul.f32 %v2882_v46, %v2382_v43  ;;  %vm2390_vm2 = vweird.f32 %v2882_v46 }
0x14d5   : > { %vm2391_vm4 = vmor %vm2389_vm3, %vm2390_vm2 }
0x14d6   : > { %v2385_v49 = vmul.f32 %v2882_v46, %v2384_v47 }
0x14d8   : > { %v2386_v50 = vmul.f32 0.5, %v2385_v49 }
0x14da   : > { %v2387_v51 = vsub.f32 1.5, %v2386_v50 }
0x14dc   : > { %v2388_v52 = vmul.f32 %v2882_v46, %v2387_v51 }
0x14de   : > { %v2392_v53 = vsel %vm2391_vm4, %v2882_v46, %v2388_v52 }
0x14df   : > { %v2393_v55 = vmul.f32 %v2392_v53, %v2376_v36 }
0x14e1   : > { %v2397_v56 = vmul.f32 %v2821_v35, %v2393_v55 }
0x14e3   : > { %v2401_v57 = vadd.f32 %v2822_v54, %v2397_v56 }
0x14e5   : > { %v2402_v58 = vmul.f32 %v2401_v57, %v2401_v57 }
0x14e7   : > { %v2403_v59 = vsel %vm1021_vm0, %v2402_v58, 0.0 }
0x14e8   : > { %v2404_v60 = vrot.slane %v2403_v59, 4 }
0x14ea   : > { %v2405_v61 = vadd.f32 %v2404_v60, %v2403_v59 }
0x14ec   : > { %v2406_v62 = vrot.slane %v2405_v61, 2 }
0x14ee   : > { %v2407_v63 = vadd.f32 %v2406_v62, %v2405_v61 }
0x14f0   : > { %v2408_v37 = vrot.slane %v2407_v63, 1 }
0x14f2   : > { %v2409_v0 = vadd.f32 %v2408_v37, %v2407_v63 }
0x14f4   : > { %v2410_v1 = vmax.f32 %v2409_v0, 1e-24 }
0x14f6   : > { %2883 = vrsqrt.f32 %v2410_v1  ;;  %vm2417_vm7 = vweird.f32 %v2410_v1 }
0x14fc   : > { %v2884_v2 = vpop.eup %2883 }
0x14fd   : > { %v2412_v3 = vmul.f32 %v2884_v2, %v2410_v1  ;;  %vm2418_vm6 = vweird.f32 %v2884_v2 }
0x14fe   : > { %vm2419_vm8 = vmor %vm2417_vm7, %vm2418_vm6 }
0x14ff   : > { %v2413_v4 = vmul.f32 %v2884_v2, %v2412_v3 }
0x1501   : > { %v2414_v5 = vmul.f32 0.5, %v2413_v4 }
0x1503   : > { %v2415_v6 = vsub.f32 1.5, %v2414_v5 }
0x1505   : > { %v2416_v7 = vmul.f32 %v2884_v2, %v2415_v6 }
0x1507   : > { %v2420_v9 = vsel %vm2419_vm8, %v2884_v2, %v2416_v7 }
0x1508   : > { %v2421_v10 = vmul.f32 %v2420_v9, %v2401_v57 }
0x150a   : > { %2710 = vmatmul.msk.f32.vlgmr.msra.gmra.mxu0 %vm1021_vm0, %v2421_v10 }
0x1587   : > { %v2450_v11 = vpop.f32.mrf.mxu0 }
0x1588   : > { %v2451_v17 = vadd.f32 %v2823_v16, %v2450_v11 }
0x158a   : > { %2885 = vtanh.f32 %v2451_v17 }
0x1590   : > { %v2886_v18 = vpop.eup %2885 }
0x1591   : > { %2711 = vmatmul.msk.f32.vlgmr.msrb.gmra.mxu1 %vm1021_vm0, %v2886_v18 }
0x160e   : > { %v2482_v21 = vpop.f32.mrf.mxu1 }
0x160f   : > { %v2483_v22 = vadd.f32 %v2824_v20, %v2482_v21 }
0x1611   : > { %v2485_v23 = vmul.f32 %v2483_v22, %v2483_v22 }
0x1613   : > { %v2486_v24 = vsel %vm1209_vm5, %v2485_v23, 0.0 }
0x1614   : > { %v2487_v25 = vrot.slane %v2486_v24, 4 }
0x1616   : > { %v2488_v26 = vadd.f32 %v2487_v25, %v2486_v24 }
0x1618   : > { %v2489_v27 = vrot.slane %v2488_v26, 2 }
0x161a   : > { %v2490_v28 = vadd.f32 %v2489_v27, %v2488_v26 }
0x161c   : > { %v2491_v29 = vrot.slane %v2490_v28, 1 }
0x161e   : > { %v2492_v30 = vadd.f32 %v2491_v29, %v2490_v28 }
0x1620   : > { %v2493_v19 = vmax.f32 %v2492_v30, 1e-24 }
0x1622   : > { %2887 = vrsqrt.f32 %v2493_v19  ;;  %vm2500_vm9 = vweird.f32 %v2493_v19 }
0x1628   : > { %v2888_v31 = vpop.eup %2887 }
0x1629   : > { %v2495_v32 = vmul.f32 %v2888_v31, %v2493_v19  ;;  %vm2501_vm0 = vweird.f32 %v2888_v31 }
0x162a   : > { %vm2502_vm10 = vmor %vm2500_vm9, %vm2501_vm0 }
0x162b   : > { %v2496_v33 = vmul.f32 %v2888_v31, %v2495_v32 }
0x162d   : > { %v2497_v34 = vmul.f32 0.5, %v2496_v33 }
0x162f   : > { %v2498_v8 = vsub.f32 1.5, %v2497_v34 }
0x1631   : > { %v2499_v36 = vmul.f32 %v2888_v31, %v2498_v8 }
0x1633   : > { %v2503_v38 = vsel %vm2502_vm10, %v2888_v31, %v2499_v36 }
0x1634   : > { %v2504_v39 = vmul.f32 %v2503_v38, %v2483_v22 }
0x1636   : > { %2505 = vst.msk [vmem:[%s999_s5] sm:$0xff] %vm1209_vm5, %v2504_v39 }
0x1637   : > { %2916 = shalt.err (!%p2913_p3)
}
0x1638   : > { %2716 = dma.vmem_to_hbm [thread:$0]  (%p3205_p5), %s2520_s6, 128, %s2522_s8, %s2507_s0  }
0x1639 PF: > { %p2722_p4 = scmp.ge.s32.totalorder %s2951_s7, 2  ;;  %s2533_s5 = sand.u32 1, %s2939_s28  }
0x163a   : > { %s2534_s4 = scalar_lea.sflag [#allocation3], %s2533_s5 }
0x163b   : > { %p2719_p7 = pnand %p2722_p4, %p3209_p6 }
0x163d   : > { %p2720_p8 = pneg %p2719_p7 }
0x163f   : > { %2934 = dma.done.wait (%p2720_p8), %s2534_s4, 128  }
0x1640   : > { %2936 = vsyncadd (%p2720_p8), %s2534_s4, 4294967168  ;;  %p75_p9 = scmp.ge.s32.totalorder %s3192_s11, 4   ;;  %s3609_s28 = smov %s2943_s1 }
0x1641   : > { %s3610_s1 = smov %s2947_s2  ;;  %s3611_s2 = smov %s3203_s18 }
0x1642   : > { %s3612_s7 = smov %s3192_s11  ;;  %77 = sbr.rel (!%p75_p9) target bundleno = 67 (0x43), region = 233 }
0x1647   :  { %2540 = vsyncpa [#allocation3], 1 }
0x1648   :  { %2542 = vsyncpa [#allocation3 + $0x1], 1 }

</bundles_post_ra>
